<compile_context>
chip_gen: v7x
topology: tpu7x:2x2x1
jax: 0.10.0
libtpu: 0.0.40
codegen_flags: <defaults>
</compile_context>

<pallas_src>
import functools
import math

import jax
import jax.numpy as jnp
from jax.experimental import pallas as pl
from jax.experimental.pallas import tpu as pltpu


# ---------------------------------------------------------------------------
# in-kernel helpers (kept in f32)
# ---------------------------------------------------------------------------
def _gelu(x):
    # tanh-approximate GELU.  TODO(synk): exact erf GELU to bit-match HF BERT defaults.
    c = math.sqrt(2.0 / math.pi)
    return 0.5 * x * (1.0 + jnp.tanh(c * (x + 0.044715 * x * x * x)))


def _layernorm(x, gamma, beta, eps):
    mu = jnp.mean(x, axis=-1, keepdims=True)
    var = jnp.mean((x - mu) ** 2, axis=-1, keepdims=True)
    return (x - mu) * jax.lax.rsqrt(var + eps) * gamma + beta


# ---------------------------------------------------------------------------
# Fused kernel: grid = (B//TB, L); TB batch elements per 'parallel' step, encoder layers
# streamed along the 'arbitrary' L axis with x resident in a VMEM scratch.
# ---------------------------------------------------------------------------
def fused_model_kernel(
        x_ref, mask_ref, emb_g_ref, emb_b_ref,
        wqkv_ref, bqkv_ref, wo_ref, wi_ref, bi_ref, wf_ref, vecs_ref,
        hg_ref, hb_ref, hw_ref, hbias_ref,
        logits_ref,
        x_vmem,
        *, num_heads):
    l = pl.program_id(1)
    n_layers = pl.num_programs(1)

    TB, S, H = x_vmem.shape
    nh = num_heads
    dh = H // nh
    scale = 1.0 / math.sqrt(dh)

    # ---- first layer iteration: embedding LayerNorm (bf16 input widened to f32),
    #      park x in VMEM for the whole layer stack.
    @pl.when(l == 0)
    def _():
        x_vmem[...] = _layernorm(x_ref[...].astype(jnp.float32),
                                 emb_g_ref[...], emb_b_ref[...], eps=1e-12)

    x = x_vmem[...]                         # (TB, S, H) f32, carried across the layer axis
    x2 = x.reshape(TB * S, H)
    mask = mask_ref[...]                    # (TB, 1, S)  1.0 = real token, 0.0 = padding

    vecs = vecs_ref[0]                      # (6, H) packed: [bo, ln1_g, ln1_b, bf, ln2_g, ln2_b]
    bo, ln1g, ln1b = vecs[0:1, :], vecs[1:2, :], vecs[2:3, :]
    bf_, ln2g, ln2b = vecs[3:4, :], vecs[4:5, :], vecs[5:6, :]

    # ---- fused QKV projection: one (TB*S, H) @ (H, 3H) bf16 matmul (M = TB*S fills MXU)
    xb = x2.astype(jnp.bfloat16)
    qkv = jnp.dot(xb, wqkv_ref[0], preferred_element_type=jnp.float32) + bqkv_ref[0]

    # ---- multi-head attention, heads batched in a single contraction per example.
    # TODO(synk): express the head split with pltpu.einshape / a (batch, head)-batched
    # einsum once multi-batch-dim dot_general lowering is guaranteed; the static TB unroll
    # below keeps the known-good 3-D layout while heads stay batched in the einsum.
    ctx_rows = []
    for b in range(TB):                     # static unroll, TB <= 4
        qkv_b = qkv[b * S:(b + 1) * S, :]   # (S, 3H)

        def split_heads(t):                 # (S, H) -> (nh, S, dh) bf16
            return jnp.swapaxes(t.reshape(S, nh, dh), 0, 1).astype(jnp.bfloat16)

        q3 = split_heads(qkv_b[:, 0:H])
        k3 = split_heads(qkv_b[:, H:2 * H])
        v3 = split_heads(qkv_b[:, 2 * H:3 * H])

        neg = ((mask[b] - 1.0) * 1e9)[None]              # (1, 1, S) key-padding bias
        s = jnp.einsum("hqd,hkd->hqk", q3, k3,
                       preferred_element_type=jnp.float32) * scale + neg
        s = s - jnp.max(s, axis=-1, keepdims=True)
        p = jnp.exp(s)
        inv = pl.reciprocal(jnp.sum(p, axis=-1, keepdims=True), approx=True)
        pb = p.astype(jnp.bfloat16) * inv.astype(jnp.bfloat16)   # bf16 before the PV matmul
        # TODO(synk): for S >~ 1024 (or BERT-base on v7x's 64 MiB VMEM), tile over keys with
        # an online-softmax (flash) accumulator instead of materializing (nh, S, S) scores.

        ctx = jnp.einsum("hqk,hkd->hqd", pb, v3,
                         preferred_element_type=jnp.float32)     # (nh, S, dh)
        ctx_rows.append(jnp.swapaxes(ctx, 0, 1).reshape(S, H))
    ctx2 = jnp.concatenate(ctx_rows, axis=0)                      # (TB*S, H)

    attn = jnp.dot(ctx2.astype(jnp.bfloat16), wo_ref[0],
                   preferred_element_type=jnp.float32) + bo
    h1 = _layernorm(x2 + attn, ln1g, ln1b, eps=1e-12)

    ffn = _gelu(jnp.dot(h1.astype(jnp.bfloat16), wi_ref[0],
                        preferred_element_type=jnp.float32) + bi_ref[0])
    ffn = jnp.dot(ffn.astype(jnp.bfloat16), wf_ref[0],
                  preferred_element_type=jnp.float32) + bf_
    out2 = _layernorm(h1 + ffn, ln2g, ln2b, eps=1e-12)

    x_vmem[...] = out2.reshape(TB, S, H)    # carry last_hidden_state to the next layer

    # ---- last layer: masked mean pooling + head LayerNorm(eps=1e-5) + Linear(H, 1),
    #      fused so the final hidden state never round-trips through HBM.
    @pl.when(l == n_layers - 1)
    def _():
        out3 = out2.reshape(TB, S, H)
        summed = jnp.einsum("bos,bsh->boh", mask, out3,
                            preferred_element_type=jnp.float32)   # (TB, 1, H)
        denom = jnp.maximum(jnp.sum(mask, axis=-1), 1e-9)         # (TB, 1), clamp(min=1e-9)
        mean_emb = summed.reshape(TB, H) / denom
        normed = _layernorm(mean_emb, hg_ref[...], hb_ref[...], eps=1e-5)
        logits = jnp.dot(normed, hw_ref[...],
                         preferred_element_type=jnp.float32) + hbias_ref[...]
        logits_ref[...] = logits.reshape(TB, 1, 1)


# ---------------------------------------------------------------------------
# Parameter construction (deterministic, synthetic — no checkpoint loading)
# Encoder layer weights stacked along a leading L axis; matmul weights stored bf16;
# Wq/Wk/Wv fused to (L,H,3H); small per-layer vectors packed into one (L,6,H) array.
# ---------------------------------------------------------------------------
def init_params(key, vocab, max_pos, H, F, num_layers):
    def nrm(k, shape, scale=0.02):
        return (scale * jax.random.normal(k, shape)).astype(jnp.float32)

    keys = iter(jax.random.split(key, 3 + 6 * num_layers))
    p = {
        "word_emb": nrm(next(keys), (vocab, H)),
        "pos_emb": nrm(next(keys), (max_pos, H)),
        "emb_ln_g": jnp.ones((1, H), jnp.float32),
        "emb_ln_b": jnp.zeros((1, H), jnp.float32),
        "head_ln_g": jnp.ones((1, H), jnp.float32),
        "head_ln_b": jnp.zeros((1, H), jnp.float32),
        "head_w": nrm(next(keys), (H, 1)),
        "head_b": jnp.zeros((1, 1), jnp.float32),
    }
    wqkv, wo, wi, wf = [], [], [], []
    for _ in range(num_layers):
        wq = nrm(next(keys), (H, H))
        wk = nrm(next(keys), (H, H))
        wv = nrm(next(keys), (H, H))
        wqkv.append(jnp.concatenate([wq, wk, wv], axis=1))       # (H, 3H)
        wo.append(nrm(next(keys), (H, H)))
        wi.append(nrm(next(keys), (H, F)))
        wf.append(nrm(next(keys), (F, H)))
    zeros_h = jnp.zeros((num_layers, 1, H), jnp.float32)
    ones_h = jnp.ones((num_layers, 1, H), jnp.float32)
    # packed per-layer H-sized vectors: rows = [bo, ln1_g, ln1_b, bf, ln2_g, ln2_b]
    layer_vecs = jnp.concatenate(
        [zeros_h, ones_h, zeros_h, zeros_h, ones_h, zeros_h], axis=1)   # (L, 6, H)
    p.update({
        "wqkv": jnp.stack(wqkv).astype(jnp.bfloat16),
        "bqkv": jnp.zeros((num_layers, 1, 3 * H), jnp.float32),
        "wo": jnp.stack(wo).astype(jnp.bfloat16),
        "wi": jnp.stack(wi).astype(jnp.bfloat16),
        "bi": jnp.zeros((num_layers, 1, F), jnp.float32),
        "wf": jnp.stack(wf).astype(jnp.bfloat16),
        "layer_vecs": layer_vecs,
    })
    # TODO(synk): optional fp8 storage for wi/wf (+ per-channel scales) on v7x, gated by flag.
    return p


# ---------------------------------------------------------------------------
# Forward: model(input_ids, attention_mask) -> masked mean -> LayerNorm -> Linear -> logits
# ---------------------------------------------------------------------------
def mean_pooling_model_forward(params, input_ids, attention_mask, *, num_heads,
                               batch_block=None):
    B, S = input_ids.shape
    H = params["word_emb"].shape[1]
    F = params["wi"].shape[2]
    L = params["wqkv"].shape[0]

    if batch_block is None:
        batch_block = next(t for t in (4, 2, 1) if B % t == 0)
    TB = batch_block
    assert B % TB == 0

    # Embedding lookup (gather) + position embeddings: plain-JAX glue outside the kernel.
    # Stored bf16 in HBM (halved input DMA); widened to f32 inside the l==0 LayerNorm.
    x = (jnp.take(params["word_emb"], input_ids, axis=0)
         + params["pos_emb"][None, :S, :]).astype(jnp.bfloat16)
    mask = attention_mask.astype(jnp.float32).reshape(B, 1, S)

    def per_batch(shape):
        return pl.BlockSpec(shape, lambda b, l: (b,) + (0,) * (len(shape) - 1))

    def per_layer(shape):
        return pl.BlockSpec(shape, lambda b, l: (l,) + (0,) * (len(shape) - 1))

    def shared(shape):
        return pl.BlockSpec(shape, lambda b, l: (0,) * len(shape))

    in_specs = [
        per_batch((TB, S, H)),                          # x (post-embedding, bf16)
        per_batch((TB, 1, S)),                          # attention mask
        shared((1, H)), shared((1, H)),                 # embedding LayerNorm
        per_layer((1, H, 3 * H)),                       # fused Wqkv
        per_layer((1, 1, 3 * H)),                       # fused bqkv
        per_layer((1, H, H)),                           # Wo
        per_layer((1, H, F)),                           # FFN in weight
        per_layer((1, 1, F)),                           # FFN in bias
        per_layer((1, F, H)),                           # FFN out weight
        per_layer((1, 6, H)),                           # packed [bo, ln1g, ln1b, bf, ln2g, ln2b]
        shared((1, H)), shared((1, H)),                 # head LayerNorm (MeanPoolingModel)
        shared((H, 1)), shared((1, 1)),                 # head Linear(H, 1)
    ]

    # vmem_limit_bytes sized from the actual (double-buffered) blocks + in-kernel activations,
    # capped at ~75% of physical VMEM (v7x ~48 MiB, v5e/v6e ~96 MiB) to leave compiler headroom.
    f32b, bf16b = 4, 2
    nh = num_heads
    blk = (TB * S * H * bf16b + TB * S * f32b
           + (3 * H * H + H * H + H * F + F * H) * bf16b
           + (3 * H + F + 6 * H) * f32b
           + (5 * H + 2) * f32b)
    act = (TB * (12 * S * H + 2 * S * F) + 3 * TB * nh * S * S) * f32b + TB * S * H * f32b
    try:
        vmem_cap = int(getattr(pltpu.get_tpu_info(), "vmem_capacity_bytes", 128 << 20))
    except Exception:
        vmem_cap = 128 << 20
    ceiling = max(int(vmem_cap * 3 // 4), 32 << 20)
    vmem_limit = int(min(max(2 * blk + act + (2 << 20), 16 << 20), ceiling))
    # TODO(synk): at BERT-base scale on v7x, additionally tile wi/wf over F (extra grid axis
    # or pl.Buffered(1)) plus flash key-tiling so resident buffers stay within the 64 MiB VMEM.

    kernel = functools.partial(fused_model_kernel, num_heads=num_heads)
    logits = pl.pallas_call(
        kernel,
        out_shape=jax.ShapeDtypeStruct((B, 1, 1), jnp.float32),
        grid=(B // TB, L),
        in_specs=in_specs,
        out_specs=pl.BlockSpec((TB, 1, 1), lambda b, l: (b, 0, 0)),
        scratch_shapes=[pltpu.VMEM((TB, S, H), jnp.float32)],
        compiler_params=pltpu.CompilerParams(
            dimension_semantics=("parallel", "arbitrary"),
            vmem_limit_bytes=vmem_limit),
    )(x, mask,
      params["emb_ln_g"], params["emb_ln_b"],
      params["wqkv"], params["bqkv"], params["wo"],
      params["wi"], params["bi"], params["wf"], params["layer_vecs"],
      params["head_ln_g"], params["head_ln_b"],
      params["head_w"], params["head_b"])
    return logits.reshape(B, 1)


if __name__ == "__main__":
    B, S, H, F = 2, 8, 32, 64
    NUM_HEADS, NUM_LAYERS, VOCAB = 2, 2, 100

    key = jax.random.PRNGKey(0)
    k_params, k_ids = jax.random.split(key)

    params = init_params(k_params, VOCAB, S, H, F, NUM_LAYERS)
    input_ids = jax.random.randint(k_ids, (B, S), 0, VOCAB, dtype=jnp.int32)
    attention_mask = jnp.array(
        [[1, 1, 1, 1, 1, 1, 1, 1],
         [1, 1, 1, 1, 1, 0, 0, 0]], dtype=jnp.int32)

    logits = mean_pooling_model_forward(params, input_ids, attention_mask,
                                        num_heads=NUM_HEADS)
    logits = jax.block_until_ready(logits)
    assert logits.shape == (B, 1) and logits.dtype == jnp.float32
    print("KERNEL_OK")
</pallas_src>

<mosaic_0001>
module attributes {stable_mosaic.version = 11 : i64} {
  func.func @fused_model_kernel(%arg0: i32, %arg1: i32, %arg2: memref<2x8x32xbf16, #tpu.memory_space<vmem>>, %arg3: memref<2x1x8xf32, #tpu.memory_space<vmem>>, %arg4: memref<1x32xf32, #tpu.memory_space<vmem>>, %arg5: memref<1x32xf32, #tpu.memory_space<vmem>>, %arg6: memref<1x32x96xbf16, #tpu.memory_space<vmem>>, %arg7: memref<1x1x96xf32, #tpu.memory_space<vmem>>, %arg8: memref<1x32x32xbf16, #tpu.memory_space<vmem>>, %arg9: memref<1x32x64xbf16, #tpu.memory_space<vmem>>, %arg10: memref<1x1x64xf32, #tpu.memory_space<vmem>>, %arg11: memref<1x64x32xbf16, #tpu.memory_space<vmem>>, %arg12: memref<1x6x32xf32, #tpu.memory_space<vmem>>, %arg13: memref<1x32xf32, #tpu.memory_space<vmem>>, %arg14: memref<1x32xf32, #tpu.memory_space<vmem>>, %arg15: memref<32x1xf32, #tpu.memory_space<vmem>>, %arg16: memref<1x1xf32, #tpu.memory_space<vmem>>, %arg17: memref<2x1x1xf32, #tpu.memory_space<vmem>>, %arg18: memref<2x8x32xf32, #tpu.memory_space<vmem>>) attributes {dimension_semantics = [#tpu.dimension_semantics<parallel>, #tpu.dimension_semantics<arbitrary>], iteration_bounds = array<i64: 1, 2>, scalar_prefetch = 0 : i64, scratch_operands = 1 : i64, tpu.core_type = #tpu.core_type<tc>, window_params = [{transform_indices = @transform_0, window_bounds = array<i64: 2, 8, 32>}, {transform_indices = @transform_1, window_bounds = array<i64: 2, 1, 8>}, {pipeline_mode = #tpu.pipeline_mode<synchronous>, transform_indices = @transform_2, window_bounds = array<i64: 1, 32>}, {pipeline_mode = #tpu.pipeline_mode<synchronous>, transform_indices = @transform_3, window_bounds = array<i64: 1, 32>}, {transform_indices = @transform_4, window_bounds = array<i64: 1, 32, 96>}, {transform_indices = @transform_5, window_bounds = array<i64: 1, 1, 96>}, {transform_indices = @transform_6, window_bounds = array<i64: 1, 32, 32>}, {transform_indices = @transform_7, window_bounds = array<i64: 1, 32, 64>}, {transform_indices = @transform_8, window_bounds = array<i64: 1, 1, 64>}, {transform_indices = @transform_9, window_bounds = array<i64: 1, 64, 32>}, {transform_indices = @transform_10, window_bounds = array<i64: 1, 6, 32>}, {pipeline_mode = #tpu.pipeline_mode<synchronous>, transform_indices = @transform_11, window_bounds = array<i64: 1, 32>}, {pipeline_mode = #tpu.pipeline_mode<synchronous>, transform_indices = @transform_12, window_bounds = array<i64: 1, 32>}, {pipeline_mode = #tpu.pipeline_mode<synchronous>, transform_indices = @transform_13, window_bounds = array<i64: 32, 1>}, {pipeline_mode = #tpu.pipeline_mode<synchronous>, transform_indices = @transform_14, window_bounds = array<i64: 1, 1>}, {transform_indices = @transform_15, window_bounds = array<i64: 2, 1, 1>}]} {
    %c0_i32 = arith.constant 0 : i32
    %0 = arith.cmpi eq, %arg1, %c0_i32 : i32
    %1 = arith.extui %0 : i1 to i32
    %c0_i32_0 = arith.constant 0 : i32
    %2 = arith.cmpi ne, %1, %c0_i32_0 : i32
    scf.if %2 {
      %c0_62 = arith.constant 0 : index
      %c0_63 = arith.constant 0 : index
      %c0_64 = arith.constant 0 : index
      %187 = vector.load %arg2[%c0_62, %c0_63, %c0_64] : memref<2x8x32xbf16, #tpu.memory_space<vmem>>, vector<2x8x32xbf16>
      %188 = arith.extf %187 : vector<2x8x32xbf16> to vector<2x8x32xf32>
      %c0_65 = arith.constant 0 : index
      %c0_66 = arith.constant 0 : index
      %189 = vector.load %arg4[%c0_65, %c0_66] : memref<1x32xf32, #tpu.memory_space<vmem>>, vector<1x32xf32>
      %c0_67 = arith.constant 0 : index
      %c0_68 = arith.constant 0 : index
      %190 = vector.load %arg5[%c0_67, %c0_68] : memref<1x32xf32, #tpu.memory_space<vmem>>, vector<1x32xf32>
      %cst_69 = arith.constant dense<0.000000e+00> : vector<2x8xf32>
      %191 = vector.multi_reduction <add>, %188, %cst_69 [2] : vector<2x8x32xf32> to vector<2x8xf32>
      %192 = vector.shape_cast %191 : vector<2x8xf32> to vector<2x8x1xf32>
      %cst_70 = arith.constant 3.200000e+01 : f32
      %193 = vector.broadcast %cst_70 : f32 to vector<2x8x1xf32>
      %194 = arith.divf %192, %193 : vector<2x8x1xf32>
      %195 = vector.broadcast %194 : vector<2x8x1xf32> to vector<2x8x32xf32>
      %196 = arith.subf %188, %195 : vector<2x8x32xf32>
      %197 = arith.mulf %196, %196 : vector<2x8x32xf32>
      %cst_71 = arith.constant dense<0.000000e+00> : vector<2x8xf32>
      %198 = vector.multi_reduction <add>, %197, %cst_71 [2] : vector<2x8x32xf32> to vector<2x8xf32>
      %199 = vector.shape_cast %198 : vector<2x8xf32> to vector<2x8x1xf32>
      %cst_72 = arith.constant 3.200000e+01 : f32
      %200 = vector.broadcast %cst_72 : f32 to vector<2x8x1xf32>
      %201 = arith.divf %199, %200 : vector<2x8x1xf32>
      %202 = vector.broadcast %194 : vector<2x8x1xf32> to vector<2x8x32xf32>
      %203 = arith.subf %188, %202 : vector<2x8x32xf32>
      %cst_73 = arith.constant 9.99999996E-13 : f32
      %204 = vector.broadcast %cst_73 : f32 to vector<2x8x1xf32>
      %205 = arith.addf %201, %204 : vector<2x8x1xf32>
      %206 = math.rsqrt %205 : vector<2x8x1xf32>
      %207 = vector.broadcast %206 : vector<2x8x1xf32> to vector<2x8x32xf32>
      %208 = arith.mulf %203, %207 : vector<2x8x32xf32>
      %209 = vector.shape_cast %189 : vector<1x32xf32> to vector<1x1x32xf32>
      %210 = vector.broadcast %209 : vector<1x1x32xf32> to vector<2x8x32xf32>
      %211 = arith.mulf %208, %210 : vector<2x8x32xf32>
      %212 = vector.shape_cast %190 : vector<1x32xf32> to vector<1x1x32xf32>
      %213 = vector.broadcast %212 : vector<1x1x32xf32> to vector<2x8x32xf32>
      %214 = arith.addf %211, %213 : vector<2x8x32xf32>
      %c0_74 = arith.constant 0 : index
      %c0_75 = arith.constant 0 : index
      %c0_76 = arith.constant 0 : index
      %215 = vector.load %arg18[%c0_74, %c0_75, %c0_76] : memref<2x8x32xf32, #tpu.memory_space<vmem>>, vector<2x8x32xf32>
      tpu.vector_store %arg18[%c0_74, %c0_75, %c0_76], %214 {strides = array<i32>} : memref<2x8x32xf32, #tpu.memory_space<vmem>>, vector<2x8x32xf32>,
    } else {
    }
    %c0 = arith.constant 0 : index
    %c0_1 = arith.constant 0 : index
    %c0_2 = arith.constant 0 : index
    %3 = vector.load %arg18[%c0, %c0_1, %c0_2] : memref<2x8x32xf32, #tpu.memory_space<vmem>>, vector<2x8x32xf32>
    %4 = vector.shape_cast %3 : vector<2x8x32xf32> to vector<16x32xf32>
    %c0_3 = arith.constant 0 : index
    %c0_4 = arith.constant 0 : index
    %c0_5 = arith.constant 0 : index
    %5 = vector.load %arg3[%c0_3, %c0_4, %c0_5] : memref<2x1x8xf32, #tpu.memory_space<vmem>>, vector<2x1x8xf32>
    %c0_6 = arith.constant 0 : index
    %c0_7 = arith.constant 0 : index
    %c0_8 = arith.constant 0 : index
    %6 = vector.load %arg12[%c0_6, %c0_7, %c0_8] : memref<1x6x32xf32, #tpu.memory_space<vmem>>, vector<1x6x32xf32>
    %7 = vector.shape_cast %6 : vector<1x6x32xf32> to vector<6x32xf32>
    %8 = vector.extract_strided_slice %7 {offsets = [0, 0], sizes = [1, 32], strides = [1, 1]} : vector<6x32xf32> to vector<1x32xf32>
    %9 = vector.extract_strided_slice %7 {offsets = [1, 0], sizes = [1, 32], strides = [1, 1]} : vector<6x32xf32> to vector<1x32xf32>
    %10 = vector.extract_strided_slice %7 {offsets = [2, 0], sizes = [1, 32], strides = [1, 1]} : vector<6x32xf32> to vector<1x32xf32>
    %11 = vector.extract_strided_slice %7 {offsets = [3, 0], sizes = [1, 32], strides = [1, 1]} : vector<6x32xf32> to vector<1x32xf32>
    %12 = vector.extract_strided_slice %7 {offsets = [4, 0], sizes = [1, 32], strides = [1, 1]} : vector<6x32xf32> to vector<1x32xf32>
    %13 = vector.extract_strided_slice %7 {offsets = [5, 0], sizes = [1, 32], strides = [1, 1]} : vector<6x32xf32> to vector<1x32xf32>
    %14 = arith.truncf %4 : vector<16x32xf32> to vector<16x32xbf16>
    %c0_9 = arith.constant 0 : index
    %c0_10 = arith.constant 0 : index
    %c0_11 = arith.constant 0 : index
    %15 = vector.load %arg6[%c0_9, %c0_10, %c0_11] : memref<1x32x96xbf16, #tpu.memory_space<vmem>>, vector<1x32x96xbf16>
    %16 = vector.shape_cast %15 : vector<1x32x96xbf16> to vector<32x96xbf16>
    %cst = arith.constant dense<0.000000e+00> : vector<16x96xf32>
    %17 = tpu.matmul %14, %16, %cst {dimension_numbers = #tpu.dot_dimension_numbers<[1], [0], [0], [1], [0, 0, 1, 1], [], []>} : vector<16x32xbf16>, vector<32x96xbf16>, vector<16x96xf32> -> vector<16x96xf32>
    %c0_12 = arith.constant 0 : index
    %c0_13 = arith.constant 0 : index
    %c0_14 = arith.constant 0 : index
    %18 = vector.load %arg7[%c0_12, %c0_13, %c0_14] : memref<1x1x96xf32, #tpu.memory_space<vmem>>, vector<1x1x96xf32>
    %19 = vector.shape_cast %18 : vector<1x1x96xf32> to vector<1x96xf32>
    %20 = vector.broadcast %19 : vector<1x96xf32> to vector<16x96xf32>
    %21 = arith.addf %17, %20 : vector<16x96xf32>
    %22 = vector.extract_strided_slice %21 {offsets = [0, 0], sizes = [8, 96], strides = [1, 1]} : vector<16x96xf32> to vector<8x96xf32>
    %23 = vector.extract_strided_slice %22 {offsets = [0, 0], sizes = [8, 32], strides = [1, 1]} : vector<8x96xf32> to vector<8x32xf32>
    %24 = vector.shape_cast %23 : vector<8x32xf32> to vector<8x2x16xf32>
    %25 = tpu.transpose %24, [1, 0, 2] : vector<8x2x16xf32> -> vector<2x8x16xf32>
    %26 = arith.truncf %25 : vector<2x8x16xf32> to vector<2x8x16xbf16>
    %27 = vector.extract_strided_slice %22 {offsets = [0, 32], sizes = [8, 32], strides = [1, 1]} : vector<8x96xf32> to vector<8x32xf32>
    %28 = vector.shape_cast %27 : vector<8x32xf32> to vector<8x2x16xf32>
    %29 = tpu.transpose %28, [1, 0, 2] : vector<8x2x16xf32> -> vector<2x8x16xf32>
    %30 = arith.truncf %29 : vector<2x8x16xf32> to vector<2x8x16xbf16>
    %31 = vector.extract_strided_slice %22 {offsets = [0, 64], sizes = [8, 32], strides = [1, 1]} : vector<8x96xf32> to vector<8x32xf32>
    %32 = vector.shape_cast %31 : vector<8x32xf32> to vector<8x2x16xf32>
    %33 = tpu.transpose %32, [1, 0, 2] : vector<8x2x16xf32> -> vector<2x8x16xf32>
    %34 = arith.truncf %33 : vector<2x8x16xf32> to vector<2x8x16xbf16>
    %35 = vector.extract_strided_slice %5 {offsets = [0, 0, 0], sizes = [1, 1, 8], strides = [1, 1, 1]} : vector<2x1x8xf32> to vector<1x1x8xf32>
    %36 = vector.shape_cast %35 : vector<1x1x8xf32> to vector<1x8xf32>
    %cst_15 = arith.constant 1.000000e+00 : f32
    %37 = vector.broadcast %cst_15 : f32 to vector<1x8xf32>
    %38 = arith.subf %36, %37 : vector<1x8xf32>
    %cst_16 = arith.constant 1.000000e+09 : f32
    %39 = vector.broadcast %cst_16 : f32 to vector<1x8xf32>
    %40 = arith.mulf %38, %39 : vector<1x8xf32>
    %41 = vector.shape_cast %40 : vector<1x8xf32> to vector<1x1x8xf32>
    "tpu.trace_start"() <{level = 10 : i32, message = "hqd,hkd->hqk"}> : () -> ()
    %cst_17 = arith.constant dense<0.000000e+00> : vector<2x8x8xf32>
    %42 = tpu.matmul %26, %30, %cst_17 {dimension_numbers = #tpu.dot_dimension_numbers<[2], [2], [1], [1], [0, 0, 0, 1, 1, 1], [0], [0]>} : vector<2x8x16xbf16>, vector<2x8x16xbf16>, vector<2x8x8xf32> -> vector<2x8x8xf32>
    "tpu.trace_stop"() : () -> ()
    %cst_18 = arith.constant 2.500000e-01 : f32
    %43 = vector.broadcast %cst_18 : f32 to vector<2x8x8xf32>
    %44 = arith.mulf %42, %43 : vector<2x8x8xf32>
    %45 = vector.broadcast %41 : vector<1x1x8xf32> to vector<2x8x8xf32>
    %46 = arith.addf %44, %45 : vector<2x8x8xf32>
    %cst_19 = arith.constant dense<0xFF800000> : vector<2x8xf32>
    %47 = vector.multi_reduction <maximumf>, %46, %cst_19 [2] : vector<2x8x8xf32> to vector<2x8xf32>
    %48 = vector.shape_cast %47 : vector<2x8xf32> to vector<2x8x1xf32>
    %49 = vector.broadcast %48 : vector<2x8x1xf32> to vector<2x8x8xf32>
    %50 = arith.subf %46, %49 : vector<2x8x8xf32>
    %51 = math.exp %50 : vector<2x8x8xf32>
    %cst_20 = arith.constant dense<0.000000e+00> : vector<2x8xf32>
    %52 = vector.multi_reduction <add>, %51, %cst_20 [2] : vector<2x8x8xf32> to vector<2x8xf32>
    %53 = vector.shape_cast %52 : vector<2x8xf32> to vector<2x8x1xf32>
    %54 = tpu.reciprocal %53 {approx = true} : vector<2x8x1xf32> -> vector<2x8x1xf32>
    %55 = arith.truncf %51 : vector<2x8x8xf32> to vector<2x8x8xbf16>
    %56 = arith.truncf %54 : vector<2x8x1xf32> to vector<2x8x1xbf16>
    %57 = vector.broadcast %56 : vector<2x8x1xbf16> to vector<2x8x8xbf16>
    %58 = arith.mulf %55, %57 : vector<2x8x8xbf16>
    "tpu.trace_start"() <{level = 10 : i32, message = "hqk,hkd->hqd"}> : () -> ()
    %cst_21 = arith.constant dense<0.000000e+00> : vector<2x8x16xf32>
    %59 = tpu.matmul %58, %34, %cst_21 {dimension_numbers = #tpu.dot_dimension_numbers<[2], [1], [1], [2], [0, 0, 0, 1, 1, 2], [0], [0]>} : vector<2x8x8xbf16>, vector<2x8x16xbf16>, vector<2x8x16xf32> -> vector<2x8x16xf32>
    "tpu.trace_stop"() : () -> ()
    %60 = tpu.transpose %59, [1, 0, 2] : vector<2x8x16xf32> -> vector<8x2x16xf32>
    %61 = vector.shape_cast %60 : vector<8x2x16xf32> to vector<8x32xf32>
    %62 = vector.extract_strided_slice %21 {offsets = [8, 0], sizes = [8, 96], strides = [1, 1]} : vector<16x96xf32> to vector<8x96xf32>
    %63 = vector.extract_strided_slice %62 {offsets = [0, 0], sizes = [8, 32], strides = [1, 1]} : vector<8x96xf32> to vector<8x32xf32>
    %64 = vector.shape_cast %63 : vector<8x32xf32> to vector<8x2x16xf32>
    %65 = tpu.transpose %64, [1, 0, 2] : vector<8x2x16xf32> -> vector<2x8x16xf32>
    %66 = arith.truncf %65 : vector<2x8x16xf32> to vector<2x8x16xbf16>
    %67 = vector.extract_strided_slice %62 {offsets = [0, 32], sizes = [8, 32], strides = [1, 1]} : vector<8x96xf32> to vector<8x32xf32>
    %68 = vector.shape_cast %67 : vector<8x32xf32> to vector<8x2x16xf32>
    %69 = tpu.transpose %68, [1, 0, 2] : vector<8x2x16xf32> -> vector<2x8x16xf32>
    %70 = arith.truncf %69 : vector<2x8x16xf32> to vector<2x8x16xbf16>
    %71 = vector.extract_strided_slice %62 {offsets = [0, 64], sizes = [8, 32], strides = [1, 1]} : vector<8x96xf32> to vector<8x32xf32>
    %72 = vector.shape_cast %71 : vector<8x32xf32> to vector<8x2x16xf32>
    %73 = tpu.transpose %72, [1, 0, 2] : vector<8x2x16xf32> -> vector<2x8x16xf32>
    %74 = arith.truncf %73 : vector<2x8x16xf32> to vector<2x8x16xbf16>
    %75 = vector.extract_strided_slice %5 {offsets = [1, 0, 0], sizes = [1, 1, 8], strides = [1, 1, 1]} : vector<2x1x8xf32> to vector<1x1x8xf32>
    %76 = vector.shape_cast %75 : vector<1x1x8xf32> to vector<1x8xf32>
    %cst_22 = arith.constant 1.000000e+00 : f32
    %77 = vector.broadcast %cst_22 : f32 to vector<1x8xf32>
    %78 = arith.subf %76, %77 : vector<1x8xf32>
    %cst_23 = arith.constant 1.000000e+09 : f32
    %79 = vector.broadcast %cst_23 : f32 to vector<1x8xf32>
    %80 = arith.mulf %78, %79 : vector<1x8xf32>
    %81 = vector.shape_cast %80 : vector<1x8xf32> to vector<1x1x8xf32>
    "tpu.trace_start"() <{level = 10 : i32, message = "hqd,hkd->hqk"}> : () -> ()
    %cst_24 = arith.constant dense<0.000000e+00> : vector<2x8x8xf32>
    %82 = tpu.matmul %66, %70, %cst_24 {dimension_numbers = #tpu.dot_dimension_numbers<[2], [2], [1], [1], [0, 0, 0, 1, 1, 1], [0], [0]>} : vector<2x8x16xbf16>, vector<2x8x16xbf16>, vector<2x8x8xf32> -> vector<2x8x8xf32>
    "tpu.trace_stop"() : () -> ()
    %cst_25 = arith.constant 2.500000e-01 : f32
    %83 = vector.broadcast %cst_25 : f32 to vector<2x8x8xf32>
    %84 = arith.mulf %82, %83 : vector<2x8x8xf32>
    %85 = vector.broadcast %81 : vector<1x1x8xf32> to vector<2x8x8xf32>
    %86 = arith.addf %84, %85 : vector<2x8x8xf32>
    %cst_26 = arith.constant dense<0xFF800000> : vector<2x8xf32>
    %87 = vector.multi_reduction <maximumf>, %86, %cst_26 [2] : vector<2x8x8xf32> to vector<2x8xf32>
    %88 = vector.shape_cast %87 : vector<2x8xf32> to vector<2x8x1xf32>
    %89 = vector.broadcast %88 : vector<2x8x1xf32> to vector<2x8x8xf32>
    %90 = arith.subf %86, %89 : vector<2x8x8xf32>
    %91 = math.exp %90 : vector<2x8x8xf32>
    %cst_27 = arith.constant dense<0.000000e+00> : vector<2x8xf32>
    %92 = vector.multi_reduction <add>, %91, %cst_27 [2] : vector<2x8x8xf32> to vector<2x8xf32>
    %93 = vector.shape_cast %92 : vector<2x8xf32> to vector<2x8x1xf32>
    %94 = tpu.reciprocal %93 {approx = true} : vector<2x8x1xf32> -> vector<2x8x1xf32>
    %95 = arith.truncf %91 : vector<2x8x8xf32> to vector<2x8x8xbf16>
    %96 = arith.truncf %94 : vector<2x8x1xf32> to vector<2x8x1xbf16>
    %97 = vector.broadcast %96 : vector<2x8x1xbf16> to vector<2x8x8xbf16>
    %98 = arith.mulf %95, %97 : vector<2x8x8xbf16>
    "tpu.trace_start"() <{level = 10 : i32, message = "hqk,hkd->hqd"}> : () -> ()
    %cst_28 = arith.constant dense<0.000000e+00> : vector<2x8x16xf32>
    %99 = tpu.matmul %98, %74, %cst_28 {dimension_numbers = #tpu.dot_dimension_numbers<[2], [1], [1], [2], [0, 0, 0, 1, 1, 2], [0], [0]>} : vector<2x8x8xbf16>, vector<2x8x16xbf16>, vector<2x8x16xf32> -> vector<2x8x16xf32>
    "tpu.trace_stop"() : () -> ()
    %100 = tpu.transpose %99, [1, 0, 2] : vector<2x8x16xf32> -> vector<8x2x16xf32>
    %101 = vector.shape_cast %100 : vector<8x2x16xf32> to vector<8x32xf32>
    %102 = tpu.concatenate %61, %101 in 0 : vector<8x32xf32>, vector<8x32xf32> -> vector<16x32xf32>
    %103 = arith.truncf %102 : vector<16x32xf32> to vector<16x32xbf16>
    %c0_29 = arith.constant 0 : index
    %c0_30 = arith.constant 0 : index
    %c0_31 = arith.constant 0 : index
    %104 = vector.load %arg8[%c0_29, %c0_30, %c0_31] : memref<1x32x32xbf16, #tpu.memory_space<vmem>>, vector<1x32x32xbf16>
    %105 = vector.shape_cast %104 : vector<1x32x32xbf16> to vector<32x32xbf16>
    %cst_32 = arith.constant dense<0.000000e+00> : vector<16x32xf32>
    %106 = tpu.matmul %103, %105, %cst_32 {dimension_numbers = #tpu.dot_dimension_numbers<[1], [0], [0], [1], [0, 0, 1, 1], [], []>} : vector<16x32xbf16>, vector<32x32xbf16>, vector<16x32xf32> -> vector<16x32xf32>
    %107 = vector.broadcast %8 : vector<1x32xf32> to vector<16x32xf32>
    %108 = arith.addf %106, %107 : vector<16x32xf32>
    %109 = arith.addf %4, %108 : vector<16x32xf32>
    %cst_33 = arith.constant dense<0.000000e+00> : vector<16xf32>
    %110 = vector.multi_reduction <add>, %109, %cst_33 [1] : vector<16x32xf32> to vector<16xf32>
    %111 = vector.shape_cast %110 : vector<16xf32> to vector<16x1xf32>
    %cst_34 = arith.constant 3.200000e+01 : f32
    %112 = vector.broadcast %cst_34 : f32 to vector<16x1xf32>
    %113 = arith.divf %111, %112 : vector<16x1xf32>
    %114 = vector.broadcast %113 : vector<16x1xf32> to vector<16x32xf32>
    %115 = arith.subf %109, %114 : vector<16x32xf32>
    %116 = arith.mulf %115, %115 : vector<16x32xf32>
    %cst_35 = arith.constant dense<0.000000e+00> : vector<16xf32>
    %117 = vector.multi_reduction <add>, %116, %cst_35 [1] : vector<16x32xf32> to vector<16xf32>
    %118 = vector.shape_cast %117 : vector<16xf32> to vector<16x1xf32>
    %cst_36 = arith.constant 3.200000e+01 : f32
    %119 = vector.broadcast %cst_36 : f32 to vector<16x1xf32>
    %120 = arith.divf %118, %119 : vector<16x1xf32>
    %121 = vector.broadcast %113 : vector<16x1xf32> to vector<16x32xf32>
    %122 = arith.subf %109, %121 : vector<16x32xf32>
    %cst_37 = arith.constant 9.99999996E-13 : f32
    %123 = vector.broadcast %cst_37 : f32 to vector<16x1xf32>
    %124 = arith.addf %120, %123 : vector<16x1xf32>
    %125 = math.rsqrt %124 : vector<16x1xf32>
    %126 = vector.broadcast %125 : vector<16x1xf32> to vector<16x32xf32>
    %127 = arith.mulf %122, %126 : vector<16x32xf32>
    %128 = vector.broadcast %9 : vector<1x32xf32> to vector<16x32xf32>
    %129 = arith.mulf %127, %128 : vector<16x32xf32>
    %130 = vector.broadcast %10 : vector<1x32xf32> to vector<16x32xf32>
    %131 = arith.addf %129, %130 : vector<16x32xf32>
    %132 = arith.truncf %131 : vector<16x32xf32> to vector<16x32xbf16>
    %c0_38 = arith.constant 0 : index
    %c0_39 = arith.constant 0 : index
    %c0_40 = arith.constant 0 : index
    %133 = vector.load %arg9[%c0_38, %c0_39, %c0_40] : memref<1x32x64xbf16, #tpu.memory_space<vmem>>, vector<1x32x64xbf16>
    %134 = vector.shape_cast %133 : vector<1x32x64xbf16> to vector<32x64xbf16>
    %cst_41 = arith.constant dense<0.000000e+00> : vector<16x64xf32>
    %135 = tpu.matmul %132, %134, %cst_41 {dimension_numbers = #tpu.dot_dimension_numbers<[1], [0], [0], [1], [0, 0, 1, 1], [], []>} : vector<16x32xbf16>, vector<32x64xbf16>, vector<16x64xf32> -> vector<16x64xf32>
    %c0_42 = arith.constant 0 : index
    %c0_43 = arith.constant 0 : index
    %c0_44 = arith.constant 0 : index
    %136 = vector.load %arg10[%c0_42, %c0_43, %c0_44] : memref<1x1x64xf32, #tpu.memory_space<vmem>>, vector<1x1x64xf32>
    %137 = vector.shape_cast %136 : vector<1x1x64xf32> to vector<1x64xf32>
    %138 = vector.broadcast %137 : vector<1x64xf32> to vector<16x64xf32>
    %139 = arith.addf %135, %138 : vector<16x64xf32>
    %cst_45 = arith.constant 5.000000e-01 : f32
    %140 = vector.broadcast %cst_45 : f32 to vector<16x64xf32>
    %141 = arith.mulf %140, %139 : vector<16x64xf32>
    %cst_46 = arith.constant 4.471500e-02 : f32
    %142 = vector.broadcast %cst_46 : f32 to vector<16x64xf32>
    %143 = arith.mulf %142, %139 : vector<16x64xf32>
    %144 = arith.mulf %143, %139 : vector<16x64xf32>
    %145 = arith.mulf %144, %139 : vector<16x64xf32>
    %146 = arith.addf %139, %145 : vector<16x64xf32>
    %cst_47 = arith.constant 0.797884583 : f32
    %147 = vector.broadcast %cst_47 : f32 to vector<16x64xf32>
    %148 = arith.mulf %147, %146 : vector<16x64xf32>
    %149 = math.tanh %148 : vector<16x64xf32>
    %cst_48 = arith.constant 1.000000e+00 : f32
    %150 = vector.broadcast %cst_48 : f32 to vector<16x64xf32>
    %151 = arith.addf %150, %149 : vector<16x64xf32>
    %152 = arith.mulf %141, %151 : vector<16x64xf32>
    %153 = arith.truncf %152 : vector<16x64xf32> to vector<16x64xbf16>
    %c0_49 = arith.constant 0 : index
    %c0_50 = arith.constant 0 : index
    %c0_51 = arith.constant 0 : index
    %154 = vector.load %arg11[%c0_49, %c0_50, %c0_51] : memref<1x64x32xbf16, #tpu.memory_space<vmem>>, vector<1x64x32xbf16>
    %155 = vector.shape_cast %154 : vector<1x64x32xbf16> to vector<64x32xbf16>
    %cst_52 = arith.constant dense<0.000000e+00> : vector<16x32xf32>
    %156 = tpu.matmul %153, %155, %cst_52 {dimension_numbers = #tpu.dot_dimension_numbers<[1], [0], [0], [1], [0, 0, 1, 1], [], []>} : vector<16x64xbf16>, vector<64x32xbf16>, vector<16x32xf32> -> vector<16x32xf32>
    %157 = vector.broadcast %11 : vector<1x32xf32> to vector<16x32xf32>
    %158 = arith.addf %156, %157 : vector<16x32xf32>
    %159 = arith.addf %131, %158 : vector<16x32xf32>
    %cst_53 = arith.constant dense<0.000000e+00> : vector<16xf32>
    %160 = vector.multi_reduction <add>, %159, %cst_53 [1] : vector<16x32xf32> to vector<16xf32>
    %161 = vector.shape_cast %160 : vector<16xf32> to vector<16x1xf32>
    %cst_54 = arith.constant 3.200000e+01 : f32
    %162 = vector.broadcast %cst_54 : f32 to vector<16x1xf32>
    %163 = arith.divf %161, %162 : vector<16x1xf32>
    %164 = vector.broadcast %163 : vector<16x1xf32> to vector<16x32xf32>
    %165 = arith.subf %159, %164 : vector<16x32xf32>
    %166 = arith.mulf %165, %165 : vector<16x32xf32>
    %cst_55 = arith.constant dense<0.000000e+00> : vector<16xf32>
    %167 = vector.multi_reduction <add>, %166, %cst_55 [1] : vector<16x32xf32> to vector<16xf32>
    %168 = vector.shape_cast %167 : vector<16xf32> to vector<16x1xf32>
    %cst_56 = arith.constant 3.200000e+01 : f32
    %169 = vector.broadcast %cst_56 : f32 to vector<16x1xf32>
    %170 = arith.divf %168, %169 : vector<16x1xf32>
    %171 = vector.broadcast %163 : vector<16x1xf32> to vector<16x32xf32>
    %172 = arith.subf %159, %171 : vector<16x32xf32>
    %cst_57 = arith.constant 9.99999996E-13 : f32
    %173 = vector.broadcast %cst_57 : f32 to vector<16x1xf32>
    %174 = arith.addf %170, %173 : vector<16x1xf32>
    %175 = math.rsqrt %174 : vector<16x1xf32>
    %176 = vector.broadcast %175 : vector<16x1xf32> to vector<16x32xf32>
    %177 = arith.mulf %172, %176 : vector<16x32xf32>
    %178 = vector.broadcast %12 : vector<1x32xf32> to vector<16x32xf32>
    %179 = arith.mulf %177, %178 : vector<16x32xf32>
    %180 = vector.broadcast %13 : vector<1x32xf32> to vector<16x32xf32>
    %181 = arith.addf %179, %180 : vector<16x32xf32>
    %182 = vector.shape_cast %181 : vector<16x32xf32> to vector<2x8x32xf32>
    %c0_58 = arith.constant 0 : index
    %c0_59 = arith.constant 0 : index
    %c0_60 = arith.constant 0 : index
    %183 = vector.load %arg18[%c0_58, %c0_59, %c0_60] : memref<2x8x32xf32, #tpu.memory_space<vmem>>, vector<2x8x32xf32>
    tpu.vector_store %arg18[%c0_58, %c0_59, %c0_60], %182 {strides = array<i32>} : memref<2x8x32xf32, #tpu.memory_space<vmem>>, vector<2x8x32xf32>,
    %c1_i32 = arith.constant 1 : i32
    %184 = arith.cmpi eq, %arg1, %c1_i32 : i32
    %185 = arith.extui %184 : i1 to i32
    %c0_i32_61 = arith.constant 0 : i32
    %186 = arith.cmpi ne, %185, %c0_i32_61 : i32
    scf.if %186 {
      %187 = vector.shape_cast %181 : vector<16x32xf32> to vector<2x8x32xf32>
      "tpu.trace_start"() <{level = 10 : i32, message = "bos,bsh->boh"}> : () -> ()
      %cst_62 = arith.constant dense<0.000000e+00> : vector<2x1x32xf32>
      %188 = tpu.matmul %5, %187, %cst_62 {dimension_numbers = #tpu.dot_dimension_numbers<[2], [1], [1], [2], [0, 0, 0, 1, 1, 2], [0], [0]>} : vector<2x1x8xf32>, vector<2x8x32xf32>, vector<2x1x32xf32> -> vector<2x1x32xf32>
      "tpu.trace_stop"() : () -> ()
      %cst_63 = arith.constant dense<0.000000e+00> : vector<2x1xf32>
      %189 = vector.multi_reduction <add>, %5, %cst_63 [2] : vector<2x1x8xf32> to vector<2x1xf32>
      %cst_64 = arith.constant 9.99999971E-10 : f32
      %190 = vector.broadcast %cst_64 : f32 to vector<2x1xf32>
      %191 = arith.maximumf %189, %190 : vector<2x1xf32>
      %192 = vector.shape_cast %188 : vector<2x1x32xf32> to vector<2x32xf32>
      %193 = vector.broadcast %191 : vector<2x1xf32> to vector<2x32xf32>
      %194 = arith.divf %192, %193 : vector<2x32xf32>
      %c0_65 = arith.constant 0 : index
      %c0_66 = arith.constant 0 : index
      %195 = vector.load %arg13[%c0_65, %c0_66] : memref<1x32xf32, #tpu.memory_space<vmem>>, vector<1x32xf32>
      %c0_67 = arith.constant 0 : index
      %c0_68 = arith.constant 0 : index
      %196 = vector.load %arg14[%c0_67, %c0_68] : memref<1x32xf32, #tpu.memory_space<vmem>>, vector<1x32xf32>
      %cst_69 = arith.constant dense<0.000000e+00> : vector<2xf32>
      %197 = vector.multi_reduction <add>, %194, %cst_69 [1] : vector<2x32xf32> to vector<2xf32>
      %198 = vector.shape_cast %197 : vector<2xf32> to vector<2x1xf32>
      %cst_70 = arith.constant 3.200000e+01 : f32
      %199 = vector.broadcast %cst_70 : f32 to vector<2x1xf32>
      %200 = arith.divf %198, %199 : vector<2x1xf32>
      %201 = vector.broadcast %200 : vector<2x1xf32> to vector<2x32xf32>
      %202 = arith.subf %194, %201 : vector<2x32xf32>
      %203 = arith.mulf %202, %202 : vector<2x32xf32>
      %cst_71 = arith.constant dense<0.000000e+00> : vector<2xf32>
      %204 = vector.multi_reduction <add>, %203, %cst_71 [1] : vector<2x32xf32> to vector<2xf32>
      %205 = vector.shape_cast %204 : vector<2xf32> to vector<2x1xf32>
      %cst_72 = arith.constant 3.200000e+01 : f32
      %206 = vector.broadcast %cst_72 : f32 to vector<2x1xf32>
      %207 = arith.divf %205, %206 : vector<2x1xf32>
      %208 = vector.broadcast %200 : vector<2x1xf32> to vector<2x32xf32>
      %209 = arith.subf %194, %208 : vector<2x32xf32>
      %cst_73 = arith.constant 9.99999974E-6 : f32
      %210 = vector.broadcast %cst_73 : f32 to vector<2x1xf32>
      %211 = arith.addf %207, %210 : vector<2x1xf32>
      %212 = math.rsqrt %211 : vector<2x1xf32>
      %213 = vector.broadcast %212 : vector<2x1xf32> to vector<2x32xf32>
      %214 = arith.mulf %209, %213 : vector<2x32xf32>
      %215 = vector.broadcast %195 : vector<1x32xf32> to vector<2x32xf32>
      %216 = arith.mulf %214, %215 : vector<2x32xf32>
      %217 = vector.broadcast %196 : vector<1x32xf32> to vector<2x32xf32>
      %218 = arith.addf %216, %217 : vector<2x32xf32>
      %c0_74 = arith.constant 0 : index
      %c0_75 = arith.constant 0 : index
      %219 = vector.load %arg15[%c0_74, %c0_75] : memref<32x1xf32, #tpu.memory_space<vmem>>, vector<32x1xf32>
      %cst_76 = arith.constant dense<0.000000e+00> : vector<2x1xf32>
      %220 = tpu.matmul %218, %219, %cst_76 {dimension_numbers = #tpu.dot_dimension_numbers<[1], [0], [0], [1], [0, 0, 1, 1], [], []>} : vector<2x32xf32>, vector<32x1xf32>, vector<2x1xf32> -> vector<2x1xf32>
      %c0_77 = arith.constant 0 : index
      %c0_78 = arith.constant 0 : index
      %221 = vector.load %arg16[%c0_77, %c0_78] : memref<1x1xf32, #tpu.memory_space<vmem>>, vector<1x1xf32>
      %222 = vector.broadcast %221 : vector<1x1xf32> to vector<2x1xf32>
      %223 = arith.addf %220, %222 : vector<2x1xf32>
      %224 = vector.shape_cast %223 : vector<2x1xf32> to vector<2x1x1xf32>
      %c0_79 = arith.constant 0 : index
      %c0_80 = arith.constant 0 : index
      %c0_81 = arith.constant 0 : index
      %225 = vector.load %arg17[%c0_79, %c0_80, %c0_81] : memref<2x1x1xf32, #tpu.memory_space<vmem>>, vector<2x1x1xf32>
      tpu.vector_store %arg17[%c0_79, %c0_80, %c0_81], %224 {strides = array<i32>} : memref<2x1x1xf32, #tpu.memory_space<vmem>>, vector<2x1x1xf32>,
    } else {
    }
    return
  }
  func.func @transform_0(%arg0: i32, %arg1: i32) -> (i32, i32, i32) {
    %c0_i32 = arith.constant 0 : i32
    %c0_i32_0 = arith.constant 0 : i32
    %c0_i32_1 = arith.constant 0 : i32
    return %arg0, %c0_i32, %c0_i32_0 : i32, i32, i32
  }
  func.func @transform_1(%arg0: i32, %arg1: i32) -> (i32, i32, i32) {
    %c0_i32 = arith.constant 0 : i32
    %c0_i32_0 = arith.constant 0 : i32
    %c0_i32_1 = arith.constant 0 : i32
    return %arg0, %c0_i32, %c0_i32_0 : i32, i32, i32
  }
  func.func @transform_2(%arg0: i32, %arg1: i32) -> (i32, i32) {
    %c0_i32 = arith.constant 0 : i32
    %c0_i32_0 = arith.constant 0 : i32
    %c0_i32_1 = arith.constant 0 : i32
    return %c0_i32, %c0_i32_0 : i32, i32
  }
  func.func @transform_3(%arg0: i32, %arg1: i32) -> (i32, i32) {
    %c0_i32 = arith.constant 0 : i32
    %c0_i32_0 = arith.constant 0 : i32
    %c0_i32_1 = arith.constant 0 : i32
    return %c0_i32, %c0_i32_0 : i32, i32
  }
  func.func @transform_4(%arg0: i32, %arg1: i32) -> (i32, i32, i32) {
    %c0_i32 = arith.constant 0 : i32
    %c0_i32_0 = arith.constant 0 : i32
    %c0_i32_1 = arith.constant 0 : i32
    return %arg1, %c0_i32, %c0_i32_0 : i32, i32, i32
  }
  func.func @transform_5(%arg0: i32, %arg1: i32) -> (i32, i32, i32) {
    %c0_i32 = arith.constant 0 : i32
    %c0_i32_0 = arith.constant 0 : i32
    %c0_i32_1 = arith.constant 0 : i32
    return %arg1, %c0_i32, %c0_i32_0 : i32, i32, i32
  }
  func.func @transform_6(%arg0: i32, %arg1: i32) -> (i32, i32, i32) {
    %c0_i32 = arith.constant 0 : i32
    %c0_i32_0 = arith.constant 0 : i32
    %c0_i32_1 = arith.constant 0 : i32
    return %arg1, %c0_i32, %c0_i32_0 : i32, i32, i32
  }
  func.func @transform_7(%arg0: i32, %arg1: i32) -> (i32, i32, i32) {
    %c0_i32 = arith.constant 0 : i32
    %c0_i32_0 = arith.constant 0 : i32
    %c0_i32_1 = arith.constant 0 : i32
    return %arg1, %c0_i32, %c0_i32_0 : i32, i32, i32
  }
  func.func @transform_8(%arg0: i32, %arg1: i32) -> (i32, i32, i32) {
    %c0_i32 = arith.constant 0 : i32
    %c0_i32_0 = arith.constant 0 : i32
    %c0_i32_1 = arith.constant 0 : i32
    return %arg1, %c0_i32, %c0_i32_0 : i32, i32, i32
  }
  func.func @transform_9(%arg0: i32, %arg1: i32) -> (i32, i32, i32) {
    %c0_i32 = arith.constant 0 : i32
    %c0_i32_0 = arith.constant 0 : i32
    %c0_i32_1 = arith.constant 0 : i32
    return %arg1, %c0_i32, %c0_i32_0 : i32, i32, i32
  }
  func.func @transform_10(%arg0: i32, %arg1: i32) -> (i32, i32, i32) {
    %c0_i32 = arith.constant 0 : i32
    %c0_i32_0 = arith.constant 0 : i32
    %c0_i32_1 = arith.constant 0 : i32
    return %arg1, %c0_i32, %c0_i32_0 : i32, i32, i32
  }
  func.func @transform_11(%arg0: i32, %arg1: i32) -> (i32, i32) {
    %c0_i32 = arith.constant 0 : i32
    %c0_i32_0 = arith.constant 0 : i32
    %c0_i32_1 = arith.constant 0 : i32
    return %c0_i32, %c0_i32_0 : i32, i32
  }
  func.func @transform_12(%arg0: i32, %arg1: i32) -> (i32, i32) {
    %c0_i32 = arith.constant 0 : i32
    %c0_i32_0 = arith.constant 0 : i32
    %c0_i32_1 = arith.constant 0 : i32
    return %c0_i32, %c0_i32_0 : i32, i32
  }
  func.func @transform_13(%arg0: i32, %arg1: i32) -> (i32, i32) {
    %c0_i32 = arith.constant 0 : i32
    %c0_i32_0 = arith.constant 0 : i32
    %c0_i32_1 = arith.constant 0 : i32
    return %c0_i32, %c0_i32_0 : i32, i32
  }
  func.func @transform_14(%arg0: i32, %arg1: i32) -> (i32, i32) {
    %c0_i32 = arith.constant 0 : i32
    %c0_i32_0 = arith.constant 0 : i32
    %c0_i32_1 = arith.constant 0 : i32
    return %c0_i32, %c0_i32_0 : i32, i32
  }
  func.func @transform_15(%arg0: i32, %arg1: i32) -> (i32, i32, i32) {
    %c0_i32 = arith.constant 0 : i32
    %c0_i32_0 = arith.constant 0 : i32
    %c0_i32_1 = arith.constant 0 : i32
    return %arg0, %c0_i32, %c0_i32_0 : i32, i32, i32
  }
}

</mosaic_0001>

<bundles_post_ra>
// kernel: tpu_custom_call.1
= control target key start
LH: loop header
LB: loop body
LE: loop exit
PB: predicated region body
PF: predicated region fallthrough
CT: control target
= control target key end

     0   :  { %s3456_s20 = smov 0   ;;  %s3458_s21 = smov 0   ;;  %s3916_s0 = inlined_call_operand.vmem [shape: bf16[2,8,32], index: 0, kind: input, shape index: {}]   ;;  %s3917_s1 = inlined_call_operand.vmem [shape: f32[2,1,8], index: 1, kind: input, shape index: {}]   ;;  %s3918_s2 = inlined_call_operand.vmem [shape: f32[1,32], index: 2, kind: input, shape index: {}]   ;;  %s3919_s3 = inlined_call_operand.vmem [shape: f32[1,32], index: 3, kind: input, shape index: {}]   ;;  %s3920_s4 = inlined_call_operand.vmem [shape: bf16[2,32,96], index: 4, kind: input, shape index: {}]   ;;  %s3921_s5 = inlined_call_operand.vmem [shape: f32[2,1,96], index: 5, kind: input, shape index: {}]   ;;  %s3922_s6 = inlined_call_operand.vmem [shape: bf16[2,32,32], index: 6, kind: input, shape index: {}]   ;;  %s3923_s7 = inlined_call_operand.vmem [shape: bf16[2,32,64], index: 7, kind: input, shape index: {}]   ;;  %s3924_s8 = inlined_call_operand.vmem [shape: f32[2,1,64], index: 8, kind: input, shape index: {}]   ;;  %s3925_s9 = inlined_call_operand.vmem [shape: bf16[2,64,32], index: 9, kind: input, shape index: {}]   ;;  %s3926_s10 = inlined_call_operand.vmem [shape: f32[2,6,32], index: 10, kind: input, shape index: {}]   ;;  %s3927_s11 = inlined_call_operand.vmem [shape: f32[1,32], index: 11, kind: input, shape index: {}]   ;;  %s3928_s12 = inlined_call_operand.vmem [shape: f32[1,32], index: 12, kind: input, shape index: {}]   ;;  %s3929_s13 = inlined_call_operand.vmem [shape: f32[32,1], index: 13, kind: input, shape index: {}]   ;;  %s3930_s14 = inlined_call_operand.<no memory space> [shape: f32[1,1], index: 14, kind: input, shape index: {}]   ;;  %s3931_s15 = inlined_call_operand.vmem [shape: f32[2,1,1], index: 15, kind: output, shape index: {}]  }
   0x1   :  { %3935 = sst [smem:[#allocation7_spill]] %s3920_s4  ;;  %v20_v0 = vstv %s3930_s14  ;;  %s3460_s22 = smov 0  }
   0x2   :  { %3936 = sst [smem:[#allocation8_spill]] %s3928_s12  ;;  %21 = vst [vmem:[#allocation3] sm:$0x1] %v20_v0 }
   0x3   :  { %3937 = sst [smem:[#allocation9_spill]] %s3931_s15 }
   0x4 LB: > { %3938 = sst [smem:[#allocation4_spill]] %s3355_s21  ;;  %s36_s14 = sadd.s32 1, %s3355_s21  ;;  %s3359_s22 = sphi %s3460_s22, %s27_s22   ;;  %s3355_s21 = sphi %s3458_s21, %s3947_s21   ;;  %s3351_s20 = sphi %s3456_s20, %s3946_s20  }
   0x5   : > { %3939 = sst [smem:[#allocation5_spill]] %s3359_s22  ;;  %p3024_p0 = scmp.ge.s32.totalorder %s3359_s22, 1 }
   0x6   : > { %p37_p1 = scmp.ge.s32.totalorder %s36_s14, 2  ;;  %p527_p2 = scmp.lt.s32.totalorder %s3359_s22, 3 }
   0x8   : > { %s3949_s14 = smov (%p37_p1, %s36_s14), 0  ;;  %p528_p3 = pnand %p3024_p0, %p527_p2 }
   0x9   : > { %3940 = sst [smem:[#allocation6_spill]] %s3949_s14  ;;  %p619_p4 = scmp.lt.s32.totalorder (!%p528_p3), %s3351_s20, 1 }
   0xa   : > { %531 = sbr.rel (%p528_p3) target bundleno = 4342 (0x10f6), region = 80  ;;  %s3941_s4 = sld [smem:[#allocation7_spill]] (!%p528_p3) }
   0xb   : > { %p3034_p5 = scmp.ne.s32.totalorder (!%p528_p3), %s3351_s20, 0 }
  0x11   : > { %s3478_s23 = scalar_select %p619_p4, %s3351_s20, 1 }
  0x12   : > { %658 = sbr.rel (%p3034_p5) target bundleno = 339 (0x153), region = 84  ;;  %v3095_v1 = vld [vmem:[%s3916_s0] sm:$0xff] (!%p3034_p5)   ;;  %vm665_vm0 = vcmask (!%p3034_p5), 261120  }
  0x13   : > { %s3090_s24 = sshll.u32 %s3478_s23, 4  ;;  %s639_s25 = scalar_lea.vmem %s3924_s8, %s3478_s23  ;;  %v3096_v2 = vunpack.c.l.bf16 (!%p3034_p5), %v3095_v1  ;;  %v3097_v3 = vunpack.c.h.bf16 (!%p3034_p5), %v3095_v1  ;;  %v3035_v23 = vld [vmem:[%s3918_s2] ss:$0 sm:$0xff] (!%p3034_p5) }
  0x14   : > { %s3488_s30 = scalar_lea.vmem %s3941_s4, %s3090_s24  ;;  %s3493_s18 = scalar_lea.vmem %s3922_s6, %s3090_s24  ;;  %v3036_v25 = vld [vmem:[%s3919_s3] ss:$0 sm:$0xff] (!%p3034_p5) }
  0x15   : > { %s3498_s21 = scalar_lea.vmem %s3923_s7, %s3090_s24  ;;  %s3093_s26 = sshll.u32 %s3478_s23, 5  ;;  %v666_v4 = vsel (!%p3034_p5), %vm665_vm0, %v3096_v2, 0.0  ;;  %v669_v5 = vsel (!%p3034_p5), %vm665_vm0, %v3097_v3, 0.0 }
  0x16   : > { %s3033_s27 = sshll.u32 %s3478_s23, 3  ;;  %s3509_s29 = scalar_lea.vmem %s3925_s9, %s3093_s26  ;;  %667 = vadd.xlane.f32.xlu0 (!%p3034_p5), %v666_v4 }
  0x17   : > { %s3514_s17 = scalar_lea.vmem %s3926_s10, %s3033_s27 }
  0x1a   : > { %670 = vadd.xlane.f32.xlu0 %v669_v5 }
  0xa3   : > { %v668_v6 = vpop.xlane.xlu0 %667 }
  0xa4   : > { %v673_v7 = vmul.f32 0.03125, %v668_v6 }
  0xa6   : > { %v675_v8 = vsub.f32 %v3096_v2, %v673_v7 }
  0xa7   : > { %v671_v9 = vpop.xlane.xlu0 %670 }
  0xa8   : > { %v674_v10 = vmul.f32 0.03125, %v671_v9  ;;  %v677_v11 = vmul.f32 %v675_v8, %v675_v8 }
  0xaa   : > { %v676_v12 = vsub.f32 %v3097_v3, %v674_v10  ;;  %v679_v13 = vsel %vm665_vm0, %v677_v11, 0.0 }
  0xab   : > { %680 = vadd.xlane.f32.xlu1 %v679_v13 }
  0xac   : > { %v678_v14 = vmul.f32 %v676_v12, %v676_v12 }
  0xae   : > { %v682_v15 = vsel %vm665_vm0, %v678_v14, 0.0 }
  0xaf   : > { %683 = vadd.xlane.f32.xlu1 %v682_v15 }
 0x138   : > { %v681_v16 = vpop.xlane.xlu1 %680 }
 0x139   : > { %v685_v17 = vmul.f32 0.03125, %v681_v16 }
 0x13b   : > { %v687_v18 = vadd.f32 1e-12, %v685_v17 }
 0x13c   : > { %v684_v19 = vpop.xlane.xlu1 %683 }
 0x13d   : > { %3284 = vrsqrt.f32 %v687_v18  ;;  %v686_v20 = vmul.f32 0.03125, %v684_v19 }
 0x13f   : > { %v688_v21 = vadd.f32 1e-12, %v686_v20 }
 0x141   : > { %3286 = vrsqrt.f32 %v688_v21 }
 0x147   : > { %v3285_v22 = vpop.eup %3284 }
 0x148   : > { %v691_v24 = vmul.f32 %v3285_v22, %v675_v8 }
 0x14a   : > { %v699_v26 = vmul.f32 %v3035_v23, %v691_v24 }
 0x14b   : > { %v3287_v27 = vpop.eup %3286 }
 0x14c   : > { %v707_v28 = vadd.f32 %v3036_v25, %v699_v26  ;;  %v692_v29 = vmul.f32 %v3287_v27, %v676_v12 }
 0x14e   : > { %709 = vst.msk [vmem:[#allocation2] sm:$0xff] %vm665_vm0, %v707_v28  ;;  %v700_v30 = vmul.f32 %v3035_v23, %v692_v29 }
 0x150   : > { %v708_v31 = vadd.f32 %v3036_v25, %v700_v30 }
 0x152   : > { %710 = vst.msk [vmem:[#allocation2 + $0x8] sm:$0xff] %vm665_vm0, %v708_v31 }
 0x153 PF: > { %v3293_v32 = vld [vmem:[%s3488_s30] sm:$0xff]   ;;  %v3361_v33 = vmov 0.0   ;;  %v3294_v34 = vld [vmem:[%s3488_s30 + $0x8] sm:$0xff]   ;;  %vm3362_vm1 = vmmov 0   ;;  %vm740_vm2 = vcmask 261120   ;;  %s3942_s19 = scalar_lea.vmem %s3921_s5, %s3478_s23  ;;  %s3363_s26 = smov 112   ;;  %v793_v48 = vlaneseq }
 0x154   : > { %3137 = vmatprep.subr.bf16.mxu0 %v3361_v33  ;;  %3145 = vmatprep.subr.bf16.mxu1 %v3361_v33  ;;  %v3037_v38 = vld [vmem:[%s3942_s19] ss:$0 sm:$0xff]  ;;  %s3364_s28 = smov 96   ;;  %v3365_v46 = vmov 1983009808   ;;  %vm1157_vm3 = vcmask 130048  }
 0x155   : > { %3138 = vmatpush3.bf16.msra.mxu0 %v3293_v32  ;;  %3141 = vmatprep.mubr.msk.bf16.mxu0 %vm3362_vm1, %v3361_v33  ;;  %v3538_v35 = vld [vmem:[#allocation2] sm:$0xff]  ;;  %v791_v47 = vunpack.c.l.s4 %v3365_v46  ;;  %v3568_v50 = vshrl.u32 %v793_v48, 7  ;;  %v3366_v54 = vmov 1934713408   ;;  %vm1260_vm4 = vcmask 64512   ;;  %s3367_s24 = smov 64  }
 0x156   : > { %3139 = vmatprep.subr.bf16.mxu0 %v3361_v33  ;;  %3147 = vmatprep.mubr.msk.bf16.mxu1 %vm3362_vm1, %v3361_v33  ;;  %v822_v55 = vunpack.c.l.s4 %v3366_v54  ;;  %vm1290_vm5 = vcmask 1043456   ;;  %vm2443_vm6 = vcmask 523264   ;;  %p3079_p6 = scmp.ne.s32.totalorder %s3351_s20, 1 }
 0x157   : > { %v792_v49 = vunpack.c.0.s8 %v791_v47  ;;  %vm2680_vm7 = vcmask (!%p3079_p6), 57344   ;;  %vm3370_vm8 = vmmov (!%p3079_p6), 0   ;;  %vm2706_vm9 = vcmask (!%p3079_p6), 1041409   ;;  %s3943_s14 = sld [smem:[#allocation8_spill]] (!%p3079_p6)  ;;  %s3944_s12 = sld [smem:[#allocation9_spill]] (!%p3079_p6) }
 0x158   : > { %v823_v57 = vunpack.c.0.s8 %v822_v55  ;;  %vm2709_vm10 = vcmask (!%p3079_p6), 254976   ;;  %vm2867_vm11 = vcmask (!%p3079_p6), 0  }
 0x159   : > { %v3540_v36 = vld [vmem:[#allocation2 + $0x8] sm:$0xff]  ;;  %3140 = vmatpush3.bf16.msra.mxu0 %v3294_v34  ;;  %v3575_v53 = vsub.s32 %v792_v49, %v3568_v50 }
 0x15a   : > { %v716_v37 = vpack.c.bf16 %v3540_v36, %v3538_v35  ;;  %3151 = vmatprep.subr.bf16.mxu0 %v3361_v33  ;;  %v3585_v1 = vsub.s32 %v823_v57, %v3568_v50 }
 0x15c   : > { %3142 = vmatmul.mubr.msk.bf16.vlgmr.msra.gmra.mrb[0].mxu0 %vm740_vm2, %v716_v37 }
 0x15d   : > { %3153 = vmatprep.mubr.msk.bf16.mxu0 %vm3362_vm1, %v3361_v33 }
 0x22f   : > { %v778_v39 = vpop.f32.mrb[0].mxu0 }
 0x230   : > { %v3556_v40 = vadd.f32 %v3037_v38, %v778_v39  ;;  %v3143_v41 = vpop.f32.mrb[1].mxu0 }
 0x231   : > { %v781_v42 = vpop.f32.mrb[2].mxu0 }
 0x232   : > { %v3558_v43 = vadd.f32 %v3037_v38, %v781_v42  ;;  %786 = vrot.lane.b32.xlu0 %v3556_v40, %s3363_s26  ;;  %v3144_v44 = vpop.f32.mrb[3].mxu0  ;;  %v789_v52 = vcombine.high %v3556_v40, %v3361_v33  ;;  %v796_v61 = vrot.slane %v3556_v40, %v3575_v53 }
 0x234   : > { %v803_v58 = vrot.slane %v789_v52, %v3575_v53 }
 0x236   : > { %907 = vrot.lane.b32.xlu0 %v3556_v40, %s3364_s28 }
 0x2a4   : > { %v3564_v45 = vpop.permute.xlu0 %786 }
 0x2a5   : > { %909 = vrot.lane.b32.xlu1 %v3564_v45, %s3364_s28  ;;  %v804_v51 = vcombine.high %v3564_v45, %v3361_v33  ;;  %v811_v59 = vrot.slane %v3564_v45, %v3575_v53 }
 0x2a7   : > { %v818_v56 = vrot.slane %v804_v51, %v3575_v53  ;;  %v819_v2 = vcombine.low %v796_v61, %v811_v59  ;;  %v820_v3 = vcombine.high %v796_v61, %v811_v59 }
 0x2a8   : > { %v908_v60 = vpop.permute.xlu0 %907 }
 0x2a9   : > { %v835_v62 = vcombine.low %v803_v58, %v818_v56  ;;  %v836_v63 = vcombine.high %v803_v58, %v818_v56  ;;  %v913_v0 = vcombine.high %v908_v60, %v3361_v33  ;;  %v920_v5 = vrot.slane %v908_v60, %v3575_v53 }
 0x2aa   : > { %v827_v14 = vrot.slane %v819_v2, %v3585_v1  ;;  %v834_v15 = vrot.slane %v820_v3, %v3585_v1 }
 0x2ab   : > { %v843_v8 = vrot.slane %v835_v62, %v3585_v1  ;;  %v850_v9 = vrot.slane %v836_v63, %v3585_v1  ;;  %v927_v10 = vrot.slane %v913_v0, %v3575_v53  ;;  %v3625_v0 = vld [vmem:[%s3917_s1] sm:$0x1] }
 0x2ac   : > { %v855_v26 = vcombine.low %v827_v14, %v834_v15  ;;  %v3041_v27 = vcombine.high %v827_v14, %v834_v15  ;;  %v3047_v2 = vadd.f32 -1.0, %v3625_v0 }
 0x2ad   : > { %v871_v20 = vcombine.low %v843_v8, %v850_v9  ;;  %v3042_v21 = vcombine.high %v843_v8, %v850_v9 }
 0x2ae   : > { %v862_v41 = vrot.slane %v855_v26, %v3575_v53  ;;  %v870_v42 = vrot.slane %v3041_v27, %v3575_v53  ;;  %v1156_v3 = vmul.f32 1e+09, %v3047_v2 }
 0x2af   : > { %v878_v32 = vrot.slane %v871_v20, %v3575_v53  ;;  %v886_v39 = vrot.slane %v3042_v21, %v3575_v53 }
 0x2b0   : > { %v887_v52 = vcombine.low %v862_v41, %v870_v42 }
 0x2b1   : > { %v895_v48 = vcombine.low %v878_v32, %v886_v39 }
 0x2b2   : > { %v894_v59 = vrot.slane %v887_v52, %v3585_v1 }
 0x2b3   : > { %v902_v56 = vrot.slane %v895_v48, %v3585_v1 }
 0x2b5   : > { %v903_v60 = vcombine.low %v894_v59, %v902_v56  ;;  %v904_v61 = vcombine.high %v894_v59, %v902_v56 }
 0x2b7   : > { %v905_v62 = vpack.c.bf16 %v903_v60, %v903_v60  ;;  %v906_v63 = vpack.c.bf16 %v904_v61, %v904_v61 }
 0x317   : > { %v910_v4 = vpop.permute.xlu1 %909 }
 0x318   : > { %v928_v6 = vcombine.high %v910_v4, %v3361_v33  ;;  %v935_v7 = vrot.slane %v910_v4, %v3575_v53  ;;  %v3629_v4 = vsub.s32 0, %v3568_v50 }
 0x31a   : > { %v942_v11 = vrot.slane %v928_v6, %v3575_v53  ;;  %v943_v12 = vcombine.low %v920_v5, %v935_v7  ;;  %v944_v13 = vcombine.high %v920_v5, %v935_v7  ;;  %v1256_v5 = vrot.slane %v1156_v3, %v3629_v4 }
 0x31c   : > { %v951_v16 = vrot.slane %v943_v12, %v3585_v1  ;;  %v958_v17 = vrot.slane %v944_v13, %v3585_v1  ;;  %v959_v18 = vcombine.low %v927_v10, %v942_v11  ;;  %v960_v19 = vcombine.high %v927_v10, %v942_v11 }
 0x31e   : > { %v967_v22 = vrot.slane %v959_v18, %v3585_v1  ;;  %v974_v23 = vrot.slane %v960_v19, %v3585_v1  ;;  %v979_v24 = vcombine.low %v951_v16, %v958_v17  ;;  %v3043_v25 = vcombine.high %v951_v16, %v958_v17 }
 0x320   : > { %v995_v28 = vcombine.low %v967_v22, %v974_v23  ;;  %v3044_v29 = vcombine.high %v967_v22, %v974_v23  ;;  %v986_v30 = vrot.slane %v979_v24, %v3575_v53  ;;  %v994_v31 = vrot.slane %v3043_v25, %v3575_v53 }
 0x322   : > { %v1002_v34 = vrot.slane %v995_v28, %v3575_v53  ;;  %v1010_v37 = vrot.slane %v3044_v29, %v3575_v53  ;;  %v1011_v38 = vcombine.low %v986_v30, %v994_v31 }
 0x324   : > { %v1019_v44 = vcombine.low %v1002_v34, %v1010_v37  ;;  %v1018_v46 = vrot.slane %v1011_v38, %v3585_v1 }
 0x326   : > { %v1026_v47 = vrot.slane %v1019_v44, %v3585_v1 }
 0x328   : > { %v1027_v49 = vcombine.low %v1018_v46, %v1026_v47  ;;  %v1028_v51 = vcombine.high %v1018_v46, %v1026_v47 }
 0x32a   : > { %v1029_v54 = vpack.c.bf16 %v1027_v49, %v1027_v49  ;;  %v1030_v55 = vpack.c.bf16 %v1028_v51, %v1028_v51 }
 0x32c   : > { %v1162_v57 = vsel %vm1157_vm3, %v1029_v54, 0  ;;  %v1208_v58 = vsel %vm1157_vm3, %v1030_v55, 0 }
 0x32d   : > { %3146 = vmatpush3.bf16.xpose.msra.mxu1 %v1162_v57  ;;  %3152 = vmatpush3.bf16.xpose.msra.mxu0 %v1208_v58 }
 0x32e   : > { %3157 = vmatprep.subr.bf16.mxu1 %v3361_v33  ;;  %3163 = vmatprep.subr.bf16.mxu0 %v3361_v33 }
 0x334   : > { %3148 = vmatmul.mubr.msk.bf16.vlgmr.msra.gmra.mrb[0].mxu1 %vm1157_vm3, %v905_v62  ;;  %3154 = vmatmul.mubr.msk.bf16.vlgmr.msra.gmra.mrb[4].mxu0 %vm1157_vm3, %v906_v63 }
 0x335   : > { %3159 = vmatprep.mubr.msk.bf16.mxu1 %vm3362_vm1, %v3361_v33  ;;  %3165 = vmatprep.mubr.msk.bf16.mxu0 %vm3362_vm1, %v3361_v33 }
 0x407   : > { %v1198_v6 = vpop.f32.mrb[0].mxu1  ;;  %v1244_v7 = vpop.f32.mrb[4].mxu0 }
 0x408   : > { %v1250_v8 = vmul.f32 0.25, %v1198_v6  ;;  %v1251_v9 = vmul.f32 0.25, %v1244_v7  ;;  %v3149_v10 = vpop.f32.mrb[1].mxu1  ;;  %v3155_v11 = vpop.f32.mrb[5].mxu0 }
 0x409   : > { %v1201_v12 = vpop.f32.mrb[2].mxu1  ;;  %v1247_v13 = vpop.f32.mrb[6].mxu0  ;;  %v1505_v11 = vcombine.high %v3558_v43, %v3361_v33 }
 0x40a   : > { %v3150_v14 = vpop.f32.mrb[3].mxu1  ;;  %v3156_v15 = vpop.f32.mrb[7].mxu0  ;;  %v1258_v16 = vadd.f32 %v1256_v5, %v1250_v8  ;;  %v1259_v17 = vadd.f32 %v1256_v5, %v1251_v9 }
 0x40b   : > { %v1512_v14 = vrot.slane %v3558_v43, %v3575_v53 }
 0x40c   : > { %v1261_v18 = vsel %vm1260_vm4, %v1258_v16, -inf  ;;  %v1264_v19 = vsel %vm1260_vm4, %v1259_v17, -inf }
 0x40d   : > { %1262 = vmax.xlane.f32.xlu1 %v1261_v18  ;;  %1265 = vmax.xlane.f32.xlu0 %v1264_v19 }
 0x41e   : > { %1031 = vrot.lane.b32.xlu1 %v3556_v40, %s3367_s24 }
 0x422   : > { %1033 = vrot.lane.b32.xlu1 %v3564_v45, %s3367_s24 }
 0x423   : > { %1502 = vrot.lane.b32.xlu0 %v3558_v43, %s3363_s26 }
 0x49a   : > { %v1263_v20 = vpop.xlane.xlu1 %1262  ;;  %v1266_v21 = vpop.xlane.xlu0 %1265 }
 0x49b   : > { %v1267_v22 = vsub.f32 %v1258_v16, %v1263_v20  ;;  %v1268_v23 = vsub.f32 %v1259_v17, %v1266_v21  ;;  %v1519_v16 = vrot.slane %v1505_v11, %v3575_v53 }
 0x49d   : > { %v1269_v24 = vmul.f32 1.442695, %v1267_v22  ;;  %v1271_v25 = vmul.f32 1.442695, %v1268_v23 }
 0x49e   : > { %v1032_v26 = vpop.permute.xlu1 %1031  ;;  %v3668_v9 = vpop.permute.xlu0 %1502 }
 0x49f   : > { %3303 = vpow2.f32 %v1269_v24  ;;  %v1037_v27 = vcombine.high %v1032_v26, %v3361_v33  ;;  %v1044_v40 = vrot.slane %v1032_v26, %v3575_v53  ;;  %v1520_v10 = vcombine.high %v3668_v9, %v3361_v33 }
 0x4a0   : > { %3305 = vpow2.f32 %v1271_v25  ;;  %v1527_v12 = vrot.slane %v3668_v9, %v3575_v53 }
 0x4a1   : > { %v1051_v30 = vrot.slane %v1037_v27, %v3575_v53  ;;  %v1534_v13 = vrot.slane %v1520_v10, %v3575_v53 }
 0x4a2   : > { %v1034_v28 = vpop.permute.xlu1 %1033  ;;  %v1535_v18 = vcombine.low %v1512_v14, %v1527_v12  ;;  %v1536_v19 = vcombine.high %v1512_v14, %v1527_v12 }
 0x4a3   : > { %v1052_v29 = vcombine.high %v1034_v28, %v3361_v33  ;;  %v1059_v45 = vrot.slane %v1034_v28, %v3575_v53  ;;  %v1551_v20 = vcombine.low %v1519_v16, %v1534_v13  ;;  %v1552_v21 = vcombine.high %v1519_v16, %v1534_v13 }
 0x4a4   : > { %v1543_v26 = vrot.slane %v1535_v18, %v3585_v1 }
 0x4a5   : > { %v1066_v31 = vrot.slane %v1052_v29, %v3575_v53  ;;  %v1067_v32 = vcombine.low %v1044_v40, %v1059_v45  ;;  %v1068_v34 = vcombine.high %v1044_v40, %v1059_v45  ;;  %v1550_v40 = vrot.slane %v1536_v19, %v3585_v1 }
 0x4a6   : > { %v1559_v29 = vrot.slane %v1551_v20, %v3585_v1  ;;  %v1566_v45 = vrot.slane %v1552_v21, %v3585_v1 }
 0x4a7   : > { %v1075_v37 = vrot.slane %v1067_v32, %v3585_v1  ;;  %v1083_v38 = vcombine.low %v1051_v30, %v1066_v31  ;;  %v1082_v39 = vrot.slane %v1068_v34, %v3585_v1  ;;  %v1084_v41 = vcombine.high %v1051_v30, %v1066_v31 }
 0x4a9   : > { %v3648_v42 = vpop.eup %3303  ;;  %v1091_v44 = vrot.slane %v1083_v38, %v3585_v1  ;;  %v1098_v47 = vrot.slane %v1084_v41, %v3585_v1  ;;  %v1103_v48 = vcombine.low %v1075_v37, %v1082_v39  ;;  %v3045_v49 = vcombine.high %v1075_v37, %v1082_v39 }
 0x4aa   : > { %v3651_v46 = vpop.eup %3305  ;;  %v1273_v51 = vsel %vm1260_vm4, %v3648_v42, 0.0 }
 0x4ab   : > { %v1276_v52 = vsel %vm1260_vm4, %v3651_v46, 0.0  ;;  %v1110_v54 = vrot.slane %v1103_v48, %v3575_v53  ;;  %v1118_v55 = vrot.slane %v3045_v49, %v3575_v53  ;;  %v1119_v56 = vcombine.low %v1091_v44, %v1098_v47  ;;  %1274 = vadd.xlane.f32.xlu0 %v1273_v51 }
 0x4ac   : > { %v3046_v57 = vcombine.high %v1091_v44, %v1098_v47  ;;  %1277 = vadd.xlane.f32.xlu1 %v1276_v52  ;;  %v1571_v47 = vcombine.low %v1543_v26, %v1550_v40  ;;  %v1587_v48 = vcombine.low %v1559_v29, %v1566_v45  ;;  %v3055_v49 = vcombine.high %v1559_v29, %v1566_v45 }
 0x4ad   : > { %v1126_v58 = vrot.slane %v1119_v56, %v3575_v53  ;;  %v1135_v60 = vcombine.low %v1110_v54, %v1118_v55  ;;  %v1281_v51 = vpack.c.bf16 %v3648_v42, %v3648_v42 }
 0x4ae   : > { %v1134_v59 = vrot.slane %v3046_v57, %v3575_v53  ;;  %v1578_v11 = vrot.slane %v1571_v47, %v3575_v53 }
 0x4af   : > { %v1142_v62 = vrot.slane %v1135_v60, %v3585_v1 }
 0x4b0   : > { %v1143_v61 = vcombine.low %v1126_v58, %v1134_v59  ;;  %v3054_v58 = vcombine.high %v1543_v26, %v1550_v40  ;;  %v1282_v59 = vpack.c.bf16 %v3651_v46, %v3651_v46 }
 0x4b2   : > { %v1150_v63 = vrot.slane %v1143_v61, %v3585_v1  ;;  %v1586_v12 = vrot.slane %v3054_v58, %v3575_v53  ;;  %v3741_v58 = vld [vmem:[%s3917_s1 + $0x1] sm:$0x1] }
 0x4b4   : > { %v1151_v2 = vcombine.low %v1142_v62, %v1150_v63  ;;  %v1152_v3 = vcombine.high %v1142_v62, %v1150_v63 }
 0x4b6   : > { %v1153_v5 = vpack.c.bf16 %v1151_v2, %v1151_v2  ;;  %v1154_v6 = vpack.c.bf16 %v1152_v3, %v1152_v3 }
 0x4b8   : > { %v1292_v7 = vsel %vm1290_vm5, %v1153_v5, 0  ;;  %v1338_v8 = vsel %vm1290_vm5, %v1154_v6, 0  ;;  %v1594_v6 = vrot.slane %v1587_v48, %v3575_v53 }
 0x4b9   : > { %3158 = vmatpush3.bf16.msra.mxu1 %v1292_v7  ;;  %3164 = vmatpush3.bf16.msra.mxu0 %v1338_v8  ;;  %v1602_v7 = vrot.slane %v3055_v49, %v3575_v53 }
 0x4ba   : > { %3169 = vmatprep.subr.bf16.mxu1 %v3361_v33  ;;  %3175 = vmatprep.subr.bf16.mxu0 %v3361_v33 }
 0x4bb   : > { %v1611_v16 = vcombine.low %v1594_v6, %v1602_v7 }
 0x4bd   : > { %1625 = vrot.lane.b32.xlu1 %v3668_v9, %s3364_s28 }
 0x4c1   : > { %1623 = vrot.lane.b32.xlu0 %v3558_v43, %s3364_s28 }
 0x538   : > { %v1275_v15 = vpop.xlane.xlu0 %1274 }
 0x539   : > { %v1278_v17 = vpop.xlane.xlu1 %1277  ;;  %3307 = vrcp.f32 %v1275_v15 }
 0x53a   : > { %3309 = vrcp.f32 %v1278_v17  ;;  %v1603_v17 = vcombine.low %v1578_v11, %v1586_v12 }
 0x53c   : > { %v1624_v22 = vpop.permute.xlu0 %1623 }
 0x53d   : > { %v1626_v23 = vpop.permute.xlu1 %1625  ;;  %v1629_v24 = vcombine.high %v1624_v22, %v3361_v33  ;;  %v1636_v25 = vrot.slane %v1624_v22, %v3575_v53  ;;  %v1618_v22 = vrot.slane %v1611_v16, %v3585_v1 }
 0x53e   : > { %v1644_v27 = vcombine.high %v1626_v23, %v3361_v33  ;;  %v1651_v28 = vrot.slane %v1626_v23, %v3575_v53 }
 0x53f   : > { %v1643_v30 = vrot.slane %v1629_v24, %v3575_v53 }
 0x540   : > { %v1658_v31 = vrot.slane %v1644_v27, %v3575_v53  ;;  %v1659_v32 = vcombine.low %v1636_v25, %v1651_v28  ;;  %v1660_v34 = vcombine.high %v1636_v25, %v1651_v28  ;;  %v1610_v25 = vrot.slane %v1603_v17, %v3585_v1 }
 0x542   : > { %v1667_v37 = vrot.slane %v1659_v32, %v3585_v1  ;;  %v1674_v38 = vrot.slane %v1660_v34, %v3585_v1  ;;  %v1675_v39 = vcombine.low %v1643_v30, %v1658_v31  ;;  %v1676_v41 = vcombine.high %v1643_v30, %v1658_v31 }
 0x543   : > { %v3308_v44 = vpop.eup %3307  ;;  %v1619_v26 = vcombine.low %v1610_v25, %v1618_v22  ;;  %v1620_v27 = vcombine.high %v1610_v25, %v1618_v22 }
 0x544   : > { %v3310_v52 = vpop.eup %3309  ;;  %v1283_v54 = vpack.c.bf16 %v3308_v44, %v3308_v44  ;;  %v1683_v55 = vrot.slane %v1675_v39, %v3585_v1  ;;  %v1690_v56 = vrot.slane %v1676_v41, %v3585_v1  ;;  %v1695_v57 = vcombine.low %v1667_v37, %v1674_v38 }
 0x545   : > { %v1284_v60 = vpack.c.bf16 %v3310_v52, %v3310_v52  ;;  %v3056_v61 = vcombine.high %v1667_v37, %v1674_v38  ;;  %v1621_v28 = vpack.c.bf16 %v1619_v26, %v1619_v26  ;;  %v1622_v40 = vpack.c.bf16 %v1620_v27, %v1620_v27 }
 0x546   : > { %v1285_v62 = vmul.bf16 %v1283_v54, %v1281_v51  ;;  %v1702_v63 = vrot.slane %v1695_v57, %v3575_v53  ;;  %v1711_v2 = vcombine.low %v1683_v55, %v1690_v56  ;;  %v3057_v3 = vcombine.high %v1683_v55, %v1690_v56 }
 0x547   : > { %v1286_v5 = vmul.bf16 %v1284_v60, %v1282_v59  ;;  %v1710_v42 = vrot.slane %v3056_v61, %v3575_v53 }
 0x548   : > { %v1718_v8 = vrot.slane %v1711_v2, %v3575_v53  ;;  %v1726_v10 = vrot.slane %v3057_v3, %v3575_v53  ;;  %3160 = vmatmul.mubr.msk.bf16.vlgmr.msra.gmra.mrb[4].mxu1 %vm1260_vm4, %v1285_v62 }
 0x549   : > { %3166 = vmatmul.mubr.msk.bf16.vlgmr.msra.gmra.mrb[8].mxu0 %vm1260_vm4, %v1286_v5  ;;  %v1727_v46 = vcombine.low %v1702_v63, %v1710_v42  ;;  %3171 = vmatprep.mubr.msk.bf16.mxu1 %vm3362_vm1, %v3361_v33  ;;  %v3060_v63 = vadd.f32 -1.0, %v3741_v58 }
 0x54a   : > { %v1735_v13 = vcombine.low %v1718_v8, %v1726_v10  ;;  %3177 = vmatprep.mubr.msk.bf16.mxu0 %vm3362_vm1, %v3361_v33 }
 0x54b   : > { %v1734_v14 = vrot.slane %v1727_v46, %v3585_v1  ;;  %v1872_v10 = vmul.f32 1e+09, %v3060_v63 }
 0x54c   : > { %v1742_v15 = vrot.slane %v1735_v13, %v3585_v1 }
 0x54d   : > { %v1971_v13 = vrot.slane %v1872_v10, %v3629_v4 }
 0x54e   : > { %v1743_v18 = vcombine.low %v1734_v14, %v1742_v15  ;;  %v1744_v19 = vcombine.high %v1734_v14, %v1742_v15 }
 0x550   : > { %v1745_v20 = vpack.c.bf16 %v1743_v18, %v1743_v18  ;;  %v1746_v21 = vpack.c.bf16 %v1744_v19, %v1744_v19 }
 0x552   : > { %v1877_v23 = vsel %vm1157_vm3, %v1745_v20, 0  ;;  %v1923_v24 = vsel %vm1157_vm3, %v1746_v21, 0 }
 0x553   : > { %3170 = vmatpush3.bf16.xpose.msra.mxu1 %v1877_v23  ;;  %3176 = vmatpush3.bf16.xpose.msra.mxu0 %v1923_v24 }
 0x554   : > { %3181 = vmatprep.subr.bf16.mxu1 %v3361_v33  ;;  %3187 = vmatprep.subr.bf16.mxu0 %v3361_v33 }
 0x55a   : > { %3172 = vmatmul.mubr.msk.bf16.vlgmr.msra.gmra.mrb[8].mxu1 %vm1157_vm3, %v1621_v28  ;;  %3178 = vmatmul.mubr.msk.bf16.vlgmr.msra.gmra.mrb[12].mxu0 %vm1157_vm3, %v1622_v40 }
 0x55b   : > { %3183 = vmatprep.mubr.msk.bf16.mxu1 %vm3362_vm1, %v3361_v33  ;;  %3189 = vmatprep.mubr.msk.bf16.mxu0 %vm3362_vm1, %v3361_v33 }
 0x61b   : > { %v1328_v29 = vpop.f32.mrb[4].mxu1 }
 0x61c   : > { %v1380_v45 = vcombine.high %v1328_v29, %v3361_v33  ;;  %v1387_v30 = vrot.slane %v1328_v29, %v3575_v53  ;;  %v1374_v31 = vpop.f32.mrb[8].mxu0  ;;  %v3161_v32 = vpop.f32.mrb[5].mxu1 }
 0x61d   : > { %v1395_v34 = vcombine.high %v1374_v31, %v3361_v33  ;;  %v1402_v37 = vrot.slane %v1374_v31, %v3575_v53  ;;  %v3167_v38 = vpop.f32.mrb[9].mxu0  ;;  %v1331_v39 = vpop.f32.mrb[6].mxu1 }
 0x61e   : > { %v1394_v41 = vrot.slane %v1380_v45, %v3575_v53  ;;  %v1377_v44 = vpop.f32.mrb[10].mxu0  ;;  %v3162_v47 = vpop.f32.mrb[7].mxu1 }
 0x61f   : > { %v1409_v48 = vrot.slane %v1395_v34, %v3575_v53  ;;  %v1410_v49 = vcombine.low %v1387_v30, %v1402_v37  ;;  %v1411_v51 = vcombine.high %v1387_v30, %v1402_v37  ;;  %v3168_v52 = vpop.f32.mrb[11].mxu0 }
 0x621   : > { %v1418_v54 = vrot.slane %v1410_v49, %v3585_v1  ;;  %v1425_v55 = vrot.slane %v1411_v51, %v3585_v1  ;;  %v1426_v56 = vcombine.low %v1394_v41, %v1409_v48  ;;  %v1427_v57 = vcombine.high %v1394_v41, %v1409_v48 }
 0x623   : > { %v1434_v59 = vrot.slane %v1426_v56, %v3585_v1  ;;  %v1441_v60 = vrot.slane %v1427_v57, %v3585_v1  ;;  %v1446_v61 = vcombine.low %v1418_v54, %v1425_v55  ;;  %v3052_v62 = vcombine.high %v1418_v54, %v1425_v55 }
 0x625   : > { %v1453_v2 = vrot.slane %v1446_v61, %v3575_v53  ;;  %v1461_v3 = vrot.slane %v3052_v62, %v3575_v53  ;;  %v1462_v5 = vcombine.low %v1434_v59, %v1441_v60  ;;  %v3053_v42 = vcombine.high %v1434_v59, %v1441_v60 }
 0x627   : > { %v1469_v6 = vrot.slane %v1462_v5, %v3575_v53  ;;  %v1477_v7 = vrot.slane %v3053_v42, %v3575_v53  ;;  %v1478_v8 = vcombine.low %v1453_v2, %v1461_v3 }
 0x629   : > { %v1486_v46 = vcombine.low %v1469_v6, %v1477_v7  ;;  %v3751_v11 = vrot.slane %v1478_v8, %v3585_v1 }
 0x62b   : > { %v3754_v12 = vrot.slane %v1486_v46, %v3585_v1 }
 0x62d   : > { %v1913_v14 = vpop.f32.mrb[8].mxu1  ;;  %v1959_v15 = vpop.f32.mrb[12].mxu0  ;;  %v1494_v16 = vcombine.low %v3751_v11, %v3754_v12  ;;  %v1495_v17 = vcombine.high %v3751_v11, %v3754_v12 }
 0x62e   : > { %v1965_v18 = vmul.f32 0.25, %v1913_v14  ;;  %v1966_v19 = vmul.f32 0.25, %v1959_v15  ;;  %v3173_v20 = vpop.f32.mrb[9].mxu1  ;;  %v3179_v21 = vpop.f32.mrb[13].mxu0 }
 0x62f   : > { %v1916_v22 = vpop.f32.mrb[10].mxu1  ;;  %v1962_v23 = vpop.f32.mrb[14].mxu0 }
 0x630   : > { %v3174_v24 = vpop.f32.mrb[11].mxu1  ;;  %v3180_v25 = vpop.f32.mrb[15].mxu0  ;;  %v1973_v26 = vadd.f32 %v1971_v13, %v1965_v18  ;;  %v1974_v27 = vadd.f32 %v1971_v13, %v1966_v19 }
 0x632   : > { %v1975_v28 = vsel %vm1260_vm4, %v1973_v26, -inf  ;;  %v1978_v40 = vsel %vm1260_vm4, %v1974_v27, -inf }
 0x633   : > { %1976 = vmax.xlane.f32.xlu0 %v1975_v28  ;;  %1979 = vmax.xlane.f32.xlu1 %v1978_v40 }
 0x644   : > { %1747 = vrot.lane.b32.xlu1 %v3558_v43, %s3367_s24 }
 0x6c0   : > { %v1977_v29 = vpop.xlane.xlu0 %1976  ;;  %v1980_v45 = vpop.xlane.xlu1 %1979 }
 0x6c1   : > { %v1981_v30 = vsub.f32 %v1973_v26, %v1977_v29  ;;  %v1982_v31 = vsub.f32 %v1974_v27, %v1980_v45 }
 0x6c3   : > { %v1983_v32 = vmul.f32 1.442695, %v1981_v30  ;;  %v1985_v34 = vmul.f32 1.442695, %v1982_v31  ;;  %v3295_v31 = vld [vmem:[%s3493_s18] sm:$0xff]  }
 0x6c4   : > { %v1748_v44 = vpop.permute.xlu1 %1747 }
 0x6c5   : > { %3311 = vpow2.f32 %v1983_v32  ;;  %v1753_v48 = vcombine.high %v1748_v44, %v3361_v33  ;;  %v1760_v51 = vrot.slane %v1748_v44, %v3575_v53 }
 0x6c6   : > { %3313 = vpow2.f32 %v1985_v34 }
 0x6c7   : > { %v1767_v55 = vrot.slane %v1753_v48, %v3575_v53 }
 0x6cf   : > { %v3312_v37 = vpop.eup %3311 }
 0x6d0   : > { %v1987_v38 = vsel %vm1260_vm4, %v3312_v37, 0.0  ;;  %v3314_v39 = vpop.eup %3313  ;;  %v1995_v27 = vpack.c.bf16 %v3312_v37, %v3312_v37 }
 0x6d1   : > { %1988 = vadd.xlane.f32.xlu0 %v1987_v38  ;;  %v1990_v41 = vsel %vm1260_vm4, %v3314_v39, 0.0  ;;  %v1996_v28 = vpack.c.bf16 %v3314_v39, %v3314_v39 }
 0x6d5   : > { %1991 = vadd.xlane.f32.xlu0 %v1990_v41 }
 0x6eb   : > { %1749 = vrot.lane.b32.xlu0 %v3668_v9, %s3367_s24 }
 0x75e   : > { %v1989_v43 = vpop.xlane.xlu0 %1988 }
 0x75f   : > { %3315 = vrcp.f32 %v1989_v43 }
 0x762   : > { %v1992_v47 = vpop.xlane.xlu0 %1991 }
 0x763   : > { %3317 = vrcp.f32 %v1992_v47 }
 0x766   : > { %v1750_v49 = vpop.permute.xlu0 %1749 }
 0x767   : > { %v1768_v52 = vcombine.high %v1750_v49, %v3361_v33  ;;  %v1775_v54 = vrot.slane %v1750_v49, %v3575_v53 }
 0x769   : > { %v1782_v56 = vrot.slane %v1768_v52, %v3575_v53  ;;  %v1783_v57 = vcombine.low %v1760_v51, %v1775_v54  ;;  %v1784_v59 = vcombine.high %v1760_v51, %v1775_v54  ;;  %v3316_v15 = vpop.eup %3315 }
 0x76a   : > { %v1997_v23 = vpack.c.bf16 %v3316_v15, %v3316_v15 }
 0x76b   : > { %v1791_v9 = vrot.slane %v1783_v57, %v3585_v1  ;;  %v1798_v60 = vrot.slane %v1784_v59, %v3585_v1  ;;  %v1799_v61 = vcombine.low %v1767_v55, %v1782_v56  ;;  %v1800_v62 = vcombine.high %v1767_v55, %v1782_v56 }
 0x76c   : > { %v1999_v45 = vmul.bf16 %v1997_v23, %v1995_v27 }
 0x76d   : > { %v1807_v63 = vrot.slane %v1799_v61, %v3585_v1  ;;  %v1814_v2 = vrot.slane %v1800_v62, %v3585_v1  ;;  %v1819_v3 = vcombine.low %v1791_v9, %v1798_v60  ;;  %v3058_v5 = vcombine.high %v1791_v9, %v1798_v60  ;;  %v3318_v20 = vpop.eup %3317 }
 0x76e   : > { %v1998_v24 = vpack.c.bf16 %v3318_v20, %v3318_v20 }
 0x76f   : > { %v1826_v42 = vrot.slane %v1819_v3, %v3575_v53  ;;  %v1834_v6 = vrot.slane %v3058_v5, %v3575_v53  ;;  %v1835_v7 = vcombine.low %v1807_v63, %v1814_v2  ;;  %v3059_v8 = vcombine.high %v1807_v63, %v1814_v2 }
 0x770   : > { %v2000_v30 = vmul.bf16 %v1998_v24, %v1996_v28 }
 0x771   : > { %v1842_v10 = vrot.slane %v1835_v7, %v3575_v53  ;;  %v1850_v46 = vrot.slane %v3059_v8, %v3575_v53  ;;  %v1851_v13 = vcombine.low %v1826_v42, %v1834_v6  ;;  %v3296_v7 = vld [vmem:[%s3493_s18 + $0x8] sm:$0xff]   ;;  %s3368_s18 = smov 16  }
 0x773   : > { %v1859_v14 = vcombine.low %v1842_v10, %v1850_v46  ;;  %v1858_v18 = vrot.slane %v1851_v13, %v3585_v1 }
 0x775   : > { %v1866_v19 = vrot.slane %v1859_v14, %v3585_v1 }
 0x777   : > { %v1867_v21 = vcombine.low %v1858_v18, %v1866_v19  ;;  %v1868_v22 = vcombine.high %v1858_v18, %v1866_v19 }
 0x779   : > { %v1869_v25 = vpack.c.bf16 %v1867_v21, %v1867_v21  ;;  %v1870_v26 = vpack.c.bf16 %v1868_v22, %v1868_v22 }
 0x77b   : > { %v2005_v40 = vsel %vm1290_vm5, %v1869_v25, 0  ;;  %v2051_v29 = vsel %vm1290_vm5, %v1870_v26, 0 }
 0x77c   : > { %3182 = vmatpush3.bf16.msra.mxu1 %v2005_v40  ;;  %3188 = vmatpush3.bf16.msra.mxu0 %v2051_v29 }
 0x77d   : > { %3193 = vmatprep.subr.bf16.mxu1 %v3361_v33  ;;  %3201 = vmatprep.subr.bf16.mxu0 %v3361_v33 }
 0x77f   : > { %3184 = vmatmul.mubr.msk.bf16.vlgmr.msra.gmra.mrb[12].mxu1 %vm1260_vm4, %v1999_v45  ;;  %3190 = vmatmul.mubr.msk.bf16.vlgmr.msra.gmra.mrb[16].mxu0 %vm1260_vm4, %v2000_v30 }
 0x780   : > { %3197 = vmatprep.mubr.msk.bf16.mxu1 %vm3362_vm1, %v3361_v33  ;;  %3205 = vmatprep.mubr.msk.bf16.mxu0 %vm3362_vm1, %v3361_v33 }
 0x781   : > { %3194 = vmatpush3.bf16.msra.mxu1 %v3295_v31 }
 0x782   : > { %3195 = vmatprep.subr.bf16.mxu1 %v3361_v33 }
 0x785   : > { %3196 = vmatpush3.bf16.msra.mxu1 %v3296_v7  ;;  %v3299_v7 = vld [vmem:[%s3509_s29] sm:$0xff]  }
 0x786   : > { %3209 = vmatprep.subr.bf16.mxu1 %v3361_v33 }
 0x852   : > { %v2041_v32 = vpop.f32.mrb[12].mxu1  ;;  %v2087_v34 = vpop.f32.mrb[16].mxu0 }
 0x853   : > { %v2093_v37 = vcombine.high %v2041_v32, %v3361_v33  ;;  %v2100_v38 = vrot.slane %v2041_v32, %v3575_v53  ;;  %v2108_v39 = vcombine.high %v2087_v34, %v3361_v33  ;;  %v2115_v41 = vrot.slane %v2087_v34, %v3575_v53  ;;  %v3185_v43 = vpop.f32.mrb[13].mxu1  ;;  %v3191_v44 = vpop.f32.mrb[17].mxu0 }
 0x854   : > { %v2044_v47 = vpop.f32.mrb[14].mxu1  ;;  %v2090_v48 = vpop.f32.mrb[18].mxu0 }
 0x855   : > { %v2107_v49 = vrot.slane %v2093_v37, %v3575_v53  ;;  %v2122_v51 = vrot.slane %v2108_v39, %v3575_v53  ;;  %v2123_v52 = vcombine.low %v2100_v38, %v2115_v41  ;;  %v2124_v54 = vcombine.high %v2100_v38, %v2115_v41  ;;  %v3186_v55 = vpop.f32.mrb[15].mxu1  ;;  %v3192_v56 = vpop.f32.mrb[19].mxu0  ;;  %v3298_v47 = vld [vmem:[%s3498_s21 + $0x8] sm:$0xff]  }
 0x856   : > { %v2310_v56 = vsub.s32 1, %v3568_v50 }
 0x857   : > { %v2131_v57 = vrot.slane %v2123_v52, %v3585_v1  ;;  %v2138_v59 = vrot.slane %v2124_v54, %v3585_v1  ;;  %v2139_v9 = vcombine.low %v2107_v49, %v2122_v51  ;;  %v2140_v60 = vcombine.high %v2107_v49, %v2122_v51 }
 0x859   : > { %v2147_v61 = vrot.slane %v2139_v9, %v3585_v1  ;;  %v2154_v62 = vrot.slane %v2140_v60, %v3585_v1  ;;  %v2159_v63 = vcombine.low %v2131_v57, %v2138_v59  ;;  %v3065_v2 = vcombine.high %v2131_v57, %v2138_v59 }
 0x85a   : > { %v2316_v59 = vsub.s32 2, %v3568_v50 }
 0x85b   : > { %v2166_v3 = vrot.slane %v2159_v63, %v3575_v53  ;;  %v2174_v5 = vrot.slane %v3065_v2, %v3575_v53  ;;  %v2175_v42 = vcombine.low %v2147_v61, %v2154_v62  ;;  %v3066_v6 = vcombine.high %v2147_v61, %v2154_v62 }
 0x85d   : > { %v2182_v8 = vrot.slane %v2175_v42, %v3575_v53  ;;  %v2190_v10 = vrot.slane %v3066_v6, %v3575_v53  ;;  %v2191_v46 = vcombine.low %v2166_v3, %v2174_v5 }
 0x85f   : > { %v2199_v13 = vcombine.low %v2182_v8, %v2190_v10  ;;  %v2198_v14 = vrot.slane %v2191_v46, %v3585_v1  ;;  %v3300_v8 = vld [vmem:[%s3509_s29 + $0x8] sm:$0xff]   ;;  %v3301_v10 = vld [vmem:[%s3509_s29 + $0x10] sm:$0xff]   ;;  %v3302_v46 = vld [vmem:[%s3509_s29 + $0x18] sm:$0xff]  }
 0x861   : > { %v2206_v15 = vrot.slane %v2199_v13, %v3585_v1  ;;  %v3827_v1 = vld [vmem:[%s3514_s17] sm:$0x3f] }
 0x862   : > { %v2311_v57 = vrot.slane %v3827_v1, %v2310_v56  ;;  %v2317_v2 = vrot.slane %v3827_v1, %v2316_v59  ;;  %v3070_v13 = vld [vmem:[%s639_s25] ss:$0 sm:$0xff] }
 0x863   : > { %v2208_v18 = vcombine.high %v2198_v14, %v2206_v15  ;;  %v2207_v19 = vcombine.low %v2198_v14, %v2206_v15 }
 0x865   : > { %v3288_v20 = vpack.i.bf16 %v2208_v18, %v1495_v17  ;;  %v2222_v17 = vrot.slane %v3827_v1, %v3629_v4 }
 0x867   : > { %3289 = vrot.lane.b32.xlu1 %v3288_v20, %s3368_s18 }
 0x8d9   : > { %v3290_v21 = vpop.permute.xlu1 %3289 }
 0x8da   : > { %v3292_v53 = vunpack.i.h.bf16 %v3290_v21  ;;  %v3291_v22 = vunpack.i.l.bf16 %v3290_v21 }
 0x8dc   : > { %v1500_v23 = vsel %vm1157_vm3, %v1494_v16, %v3291_v22  ;;  %v2213_v24 = vsel %vm1157_vm3, %v2207_v19, %v3292_v53 }
 0x8dd   : > { %v2214_v25 = vpack.c.bf16 %v2213_v24, %v1500_v23 }
 0x8df   : > { %3198 = vmatmul.mubr.msk.bf16.vlgmr.msra.gmra.mrb[16].mxu1 %vm740_vm2, %v2214_v25 }
 0x8e0   : > { %3217 = vmatprep.mubr.msk.bf16.mxu1 %vm3362_vm1, %v3361_v33  ;;  %3210 = vmatpush3.bf16.msra.mxu1 %v3299_v7  ;;  %v2524_v7 = vsub.s32 5, %v3568_v50 }
 0x8e1   : > { %3211 = vmatprep.subr.bf16.mxu1 %v3361_v33 }
 0x8e4   : > { %3212 = vmatpush3.bf16.msra.mxu1 %v3300_v8 }
 0x8e5   : > { %3213 = vmatprep.subr.bf16.mxu1 %v3361_v33 }
 0x8e8   : > { %3214 = vmatpush3.bf16.msra.mxu1 %v3301_v10 }
 0x8e9   : > { %3215 = vmatprep.subr.bf16.mxu1 %v3361_v33 }
 0x8ec   : > { %3216 = vmatpush3.bf16.msra.mxu1 %v3302_v46  ;;  %v2525_v46 = vrot.slane %v3827_v1, %v2524_v7  ;;  %v3372_v7 = vmov (!%p3079_p6), 1966171168  }
 0x9b2   : > { %v2272_v26 = vpop.f32.mrb[16].mxu1 }
 0x9b3   : > { %v2273_v27 = vadd.f32 %v2272_v26, %v2222_v17  ;;  %v3199_v28 = vpop.f32.mrb[17].mxu1 }
 0x9b4   : > { %v2275_v40 = vpop.f32.mrb[18].mxu1 }
 0x9b5   : > { %v2276_v11 = vadd.f32 %v2275_v40, %v2222_v17  ;;  %v3200_v12 = vpop.f32.mrb[19].mxu1  ;;  %v2279_v16 = vadd.f32 %v2273_v27, %v3538_v35 }
 0x9b7   : > { %v2281_v29 = vsel %vm740_vm2, %v2279_v16, 0.0  ;;  %v2280_v45 = vadd.f32 %v2276_v11, %v3540_v36  ;;  %v3297_v36 = vld [vmem:[%s3498_s21] sm:$0xff]  }
 0x9b8   : > { %2282 = vadd.xlane.f32.xlu1 %v2281_v29  ;;  %3202 = vmatpush3.bf16.msra.mxu0 %v3297_v36 }
 0x9b9   : > { %v2284_v30 = vsel %vm740_vm2, %v2280_v45, 0.0  ;;  %3203 = vmatprep.subr.bf16.mxu0 %v3361_v33 }
 0x9ba   : > { %2285 = vadd.xlane.f32.xlu0 %v2284_v30 }
 0x9bc   : > { %3204 = vmatpush3.bf16.msra.mxu0 %v3298_v47 }
 0xa45   : > { %v2283_v31 = vpop.xlane.xlu1 %2282 }
 0xa46   : > { %v2288_v32 = vmul.f32 0.03125, %v2283_v31 }
 0xa47   : > { %v2286_v34 = vpop.xlane.xlu0 %2285 }
 0xa48   : > { %v2290_v37 = vsub.f32 %v2279_v16, %v2288_v32  ;;  %v2289_v38 = vmul.f32 0.03125, %v2286_v34  ;;  %v2417_v34 = vsub.s32 3, %v3568_v50 }
 0xa4a   : > { %v2291_v39 = vsub.f32 %v2280_v45, %v2289_v38  ;;  %v2292_v41 = vmul.f32 %v2290_v37, %v2290_v37 }
 0xa4c   : > { %v2294_v43 = vsel %vm740_vm2, %v2292_v41, 0.0  ;;  %v2293_v35 = vmul.f32 %v2291_v39, %v2291_v39 }
 0xa4d   : > { %2295 = vadd.xlane.f32.xlu0 %v2294_v43 }
 0xa4e   : > { %v2297_v44 = vsel %vm740_vm2, %v2293_v35, 0.0 }
 0xa4f   : > { %2298 = vadd.xlane.f32.xlu1 %v2297_v44 }
 0xada   : > { %v2296_v48 = vpop.xlane.xlu0 %2295 }
 0xadb   : > { %v2300_v49 = vmul.f32 0.03125, %v2296_v48 }
 0xadc   : > { %v2299_v51 = vpop.xlane.xlu1 %2298 }
 0xadd   : > { %v2302_v52 = vadd.f32 1e-12, %v2300_v49  ;;  %v2301_v54 = vmul.f32 0.03125, %v2299_v51 }
 0xadf   : > { %3319 = vrsqrt.f32 %v2302_v52  ;;  %v2303_v55 = vadd.f32 1e-12, %v2301_v54 }
 0xae1   : > { %3321 = vrsqrt.f32 %v2303_v55 }
 0xae9   : > { %v3320_v9 = vpop.eup %3319 }
 0xaea   : > { %v2306_v60 = vmul.f32 %v3320_v9, %v2290_v37  ;;  %v2418_v37 = vrot.slane %v3827_v1, %v2417_v34 }
 0xaeb   : > { %v3322_v61 = vpop.eup %3321 }
 0xaec   : > { %v2312_v62 = vmul.f32 %v2311_v57, %v2306_v60  ;;  %v2307_v63 = vmul.f32 %v3322_v61, %v2291_v39 }
 0xaee   : > { %v2313_v3 = vmul.f32 %v2311_v57, %v2307_v63  ;;  %v2318_v5 = vadd.f32 %v2317_v2, %v2312_v62 }
 0xaf0   : > { %v2319_v42 = vadd.f32 %v2317_v2, %v2313_v3 }
 0xaf2   : > { %v2320_v6 = vpack.c.bf16 %v2319_v42, %v2318_v5 }
 0xaf4   : > { %3206 = vmatmul.mubr.msk.bf16.vlgmr.msra.gmra.mrb[20].mxu0 %vm740_vm2, %v2320_v6  ;;  %v2518_v6 = vsub.s32 4, %v3568_v50 }
 0xaf6   : > { %v2519_v8 = vrot.slane %v3827_v1, %v2518_v6  ;;  %v2684_v1 = vsel (!%p3079_p6), %vm2680_vm7, %v3741_v58, 0.0 }
 0xbc7   : > { %v2381_v14 = vpop.f32.mrb[20].mxu0 }
 0xbc8   : > { %v2382_v15 = vadd.f32 %v3070_v13, %v2381_v14  ;;  %v3207_v18 = vpop.f32.mrb[21].mxu0 }
 0xbc9   : > { %v2384_v19 = vpop.f32.mrb[22].mxu0 }
 0xbca   : > { %v2390_v20 = vmul.f32 0.044715, %v2382_v15  ;;  %v2385_v21 = vadd.f32 %v3070_v13, %v2384_v19  ;;  %v3208_v53 = vpop.f32.mrb[23].mxu0  ;;  %v2388_v16 = vmul.f32 0.5, %v2382_v15 }
 0xbcb   : > { %v3369_v53 = vmov (!%p3079_p6), 0.0  }
 0xbcc   : > { %v2392_v22 = vmul.f32 %v2390_v20, %v2382_v15  ;;  %v2391_v23 = vmul.f32 0.044715, %v2385_v21  ;;  %v2389_v29 = vmul.f32 0.5, %v2385_v21  ;;  %3221 = vmatprep.subr.mxu1 (!%p3079_p6), %v3369_v53  ;;  %3239 = vmatprep.mubr.msk.f32.mxu0 (!%p3079_p6), %vm3370_vm8, %v3369_v53 }
 0xbce   : > { %v2394_v24 = vmul.f32 %v2392_v22, %v2382_v15  ;;  %v2393_v25 = vmul.f32 %v2391_v23, %v2385_v21  ;;  %v2681_v22 = vsel (!%p3079_p6), %vm2680_vm7, %v3625_v0, 0.0 }
 0xbd0   : > { %v2396_v17 = vadd.f32 %v2394_v24, %v2382_v15  ;;  %v2395_v26 = vmul.f32 %v2393_v25, %v2385_v21 }
 0xbd2   : > { %v2398_v33 = vmul.f32 0.7978846, %v2396_v17  ;;  %v2397_v27 = vadd.f32 %v2395_v26, %v2385_v21 }
 0xbd4   : > { %3323 = vtanh.f32 %v2398_v33  ;;  %v2399_v28 = vmul.f32 0.7978846, %v2397_v27 }
 0xbd6   : > { %3325 = vtanh.f32 %v2399_v28 }
 0xbde   : > { %v3324_v40 = vpop.eup %3323 }
 0xbdf   : > { %v2402_v11 = vadd.f32 1.0, %v3324_v40 }
 0xbe0   : > { %v3326_v12 = vpop.eup %3325 }
 0xbe1   : > { %v2403_v45 = vadd.f32 1.0, %v3326_v12  ;;  %v2404_v30 = vmul.f32 %v2402_v11, %v2388_v16 }
 0xbe3   : > { %v2405_v31 = vmul.f32 %v2403_v45, %v2389_v29 }
 0xbe5   : > { %v2406_v32 = vpack.c.bf16 %v2405_v31, %v2404_v30 }
 0xbe7   : > { %3218 = vmatmul.mubr.msk.bf16.vlgmr.msra.gmra.mrb[20].mxu1 %vm2443_vm6, %v2406_v32 }
 0xbe8   : > { %3223 = vmatprep.mubr.msk.f32.mxu1 (!%p3079_p6), %vm3370_vm8, %v3369_v53 }
 0xcba   : > { %v2481_v38 = vpop.f32.mrb[20].mxu1 }
 0xcbb   : > { %v2482_v39 = vadd.f32 %v2481_v38, %v2418_v37  ;;  %v3219_v41 = vpop.f32.mrb[21].mxu1 }
 0xcbc   : > { %v2484_v43 = vpop.f32.mrb[22].mxu1 }
 0xcbd   : > { %v2485_v35 = vadd.f32 %v2484_v43, %v2418_v37  ;;  %v3220_v44 = vpop.f32.mrb[23].mxu1  ;;  %v2488_v36 = vadd.f32 %v2482_v39, %v2318_v5 }
 0xcbe   : > { %v2755_v44 = vld [vmem:[%s3929_s13] sm:$0xff] (!%p3079_p6) }
 0xcbf   : > { %v2490_v47 = vsel %vm740_vm2, %v2488_v36, 0.0  ;;  %v2489_v48 = vadd.f32 %v2485_v35, %v2319_v42 }
 0xcc0   : > { %2491 = vadd.xlane.f32.xlu0 %v2490_v47  ;;  %v2757_v47 = vld [vmem:[%s3929_s13 + $0x10] sm:$0xff] (!%p3079_p6) }
 0xcc1   : > { %v2493_v49 = vsel %vm740_vm2, %v2489_v48, 0.0 }
 0xcc2   : > { %2494 = vadd.xlane.f32.xlu1 %v2493_v49 }
 0xd4d   : > { %v2492_v51 = vpop.xlane.xlu0 %2491 }
 0xd4e   : > { %v2496_v52 = vmul.f32 0.03125, %v2492_v51  ;;  %v2758_v51 = vld [vmem:[%s3929_s13 + $0x18] sm:$0xff] (!%p3079_p6) }
 0xd4f   : > { %v2495_v54 = vpop.xlane.xlu1 %2494 }
 0xd50   : > { %v2498_v55 = vsub.f32 %v2488_v36, %v2496_v52  ;;  %v2497_v56 = vmul.f32 0.03125, %v2495_v54  ;;  %v2756_v36 = vld [vmem:[%s3929_s13 + $0x8] sm:$0xff] (!%p3079_p6)  ;;  %v3246_v52 = vpack.c.bf16 (!%p3079_p6), %v2758_v51, %v2757_v47 }
 0xd51   : > { %v3243_v49 = vpack.c.bf16 (!%p3079_p6), %v2756_v36, %v2755_v44 }
 0xd52   : > { %v2499_v57 = vsub.f32 %v2489_v48, %v2497_v56  ;;  %v2500_v59 = vmul.f32 %v2498_v55, %v2498_v55  ;;  %v3371_v48 = vmov (!%p3079_p6), 0.0|0.0  }
 0xd53   : > { %3242 = vmatprep.subr.bf16.mxu0 (!%p3079_p6), %v3371_v48 }
 0xd54   : > { %v2502_v9 = vsel %vm740_vm2, %v2500_v59, 0.0  ;;  %v2501_v60 = vmul.f32 %v2499_v57, %v2499_v57  ;;  %3244 = vmatpush3.bf16.msra.mxu0 (!%p3079_p6), %v3243_v49 }
 0xd55   : > { %2503 = vadd.xlane.f32.xlu0 %v2502_v9  ;;  %3245 = vmatprep.subr.bf16.mxu0 (!%p3079_p6), %v3371_v48 }
 0xd56   : > { %v2505_v61 = vsel %vm740_vm2, %v2501_v60, 0.0  ;;  %v3082_v60 = vld [vmem:[%s3927_s11] ss:$0 sm:$0xff] (!%p3079_p6) }
 0xd57   : > { %2506 = vadd.xlane.f32.xlu1 %v2505_v61 }
 0xd58   : > { %3247 = vmatpush3.bf16.msra.mxu0 (!%p3079_p6), %v3246_v52 }
 0xd59   : > { %2685 = vadd.xlane.f32.xlu0 (!%p3079_p6), %v2684_v1 }
 0xd5d   : > { %2682 = vadd.xlane.f32.xlu0 (!%p3079_p6), %v2681_v22 }
 0xde2   : > { %v2504_v62 = vpop.xlane.xlu0 %2503 }
 0xde3   : > { %v2508_v63 = vmul.f32 0.03125, %v2504_v62 }
 0xde4   : > { %v2507_v2 = vpop.xlane.xlu1 %2506 }
 0xde5   : > { %v2510_v3 = vadd.f32 1e-12, %v2508_v63  ;;  %v2509_v5 = vmul.f32 0.03125, %v2507_v2  ;;  %v3083_v2 = vld [vmem:[%s3943_s14] ss:$0 sm:$0xff] (!%p3079_p6) }
 0xde6   : > { %v2686_v23 = vpop.xlane.xlu0 (!%p3079_p6), %2685 }
 0xde7   : > { %3327 = vrsqrt.f32 %v2510_v3  ;;  %v2511_v42 = vadd.f32 1e-12, %v2509_v5  ;;  %v2688_v25 = vmax.f32 (!%p3079_p6), %v2686_v23, 1e-09 }
 0xde9   : > { %3329 = vrsqrt.f32 %v2511_v42  ;;  %v2696_v26 = vrot.slane (!%p3079_p6), %v2688_v25, %v3629_v4 }
 0xdea   : > { %v2683_v24 = vpop.xlane.xlu0 (!%p3079_p6), %2682 }
 0xdeb   : > { %v2687_v17 = vmax.f32 (!%p3079_p6), %v2683_v24, 1e-09  ;;  %3331 = vrcp.f32 (!%p3079_p6), %v2696_v26 }
 0xded   : > { %v2692_v33 = vrot.slane (!%p3079_p6), %v2687_v17, %v3629_v4 }
 0xdef   : > { %3333 = vrcp.f32 (!%p3079_p6), %v2692_v33 }
 0xdf1   : > { %v3328_v10 = vpop.eup %3327 }
 0xdf2   : > { %v2514_v13 = vmul.f32 %v3328_v10, %v2498_v55 }
 0xdf3   : > { %v3330_v14 = vpop.eup %3329 }
 0xdf4   : > { %v2520_v15 = vmul.f32 %v2519_v8, %v2514_v13  ;;  %v2515_v18 = vmul.f32 %v3330_v14, %v2499_v57  ;;  %2533 = sbr.rel (%p3079_p6) target bundleno = 4342 (0x10f6), region = 88 }
 0xdf6   : > { %v2526_v19 = vadd.f32 %v2525_v46, %v2520_v15  ;;  %v2521_v20 = vmul.f32 %v2519_v8, %v2515_v18  ;;  %v2844_v8 = vunpack.c.l.s4 (!%p3079_p6), %v3372_v7 }
 0xdf8   : > { %2528 = vst.msk [vmem:[#allocation2] sm:$0xff] %vm740_vm2, %v2526_v19  ;;  %v2527_v21 = vadd.f32 %v2525_v46, %v2521_v20  ;;  %3222 = vmatpush3.msra.mxu1 (!%p3079_p6), %v2526_v19  ;;  %v2845_v10 = vunpack.c.0.s8 (!%p3079_p6), %v2844_v8  ;;  %v3084_v46 = vld [vmem:[#allocation3] ss:$0 sm:$0xff] (!%p3079_p6) }
 0xdf9   : > { %3224 = vmatmul.mubr.msk.f32.vlgmr.msra.gmra.mrb[0].mxu1 (!%p3079_p6), %vm1260_vm4, %v3625_v0  ;;  %3226 = vmatprep.subr.mxu1 (!%p3079_p6), %v3369_v53  ;;  %v3332_v0 = vpop.eup (!%p3079_p6), %3331 }
 0xdfa   : > { %2529 = vst.msk [vmem:[#allocation2 + $0x8] sm:$0xff] %vm740_vm2, %v2527_v21  ;;  %3227 = vmatpush3.msra.mxu1 (!%p3079_p6), %v2527_v21  ;;  %3228 = vmatprep.mubr.msk.f32.mxu1 (!%p3079_p6), %vm3370_vm8, %v3369_v53  ;;  %v3334_v40 = vpop.eup (!%p3079_p6), %3333  ;;  %v2848_v13 = vsub.s32 (!%p3079_p6), %v2845_v10, %v3568_v50 }
 0xdfd   : > { %3229 = vmatmul.mubr.msk.f32.vlgmr.msra.gmra.mrb[2].mxu1 %vm1260_vm4, %v3741_v58 }
 0xecc   : > { %v2603_v27 = vpop.f32.mrb[0].mxu1 }
 0xecd   : > { %v3225_v28 = vpop.f32.mrb[1].mxu1  ;;  %v2698_v29 = vmul.f32 %v3334_v40, %v2603_v27 }
 0xed0   : > { %v2676_v11 = vpop.f32.mrb[2].mxu1 }
 0xed1   : > { %v2700_v12 = vmul.f32 %v3332_v0, %v2676_v11  ;;  %v3230_v16 = vpop.f32.mrb[3].mxu1 }
 0xed3   : > { %v2705_v58 = vrot.slane %v2700_v12, 7 }
 0xed5   : > { %v2707_v45 = vsel %vm2706_vm9, %v2705_v58, %v2698_v29 }
 0xed6   : > { %v2710_v30 = vsel %vm2709_vm10, %v2707_v45, 0.0 }
 0xed7   : > { %2711 = vadd.xlane.f32.xlu1 %v2710_v30 }
 0xf64   : > { %v2712_v31 = vpop.xlane.xlu1 %2711 }
 0xf65   : > { %v2713_v32 = vmul.f32 0.03125, %v2712_v31 }
 0xf67   : > { %v2715_v4 = vrot.slane %v2713_v32, 1  ;;  %v2718_v34 = vsub.f32 %v2698_v29, %v2713_v32 }
 0xf69   : > { %v2719_v37 = vsub.f32 %v2700_v12, %v2715_v4  ;;  %v2720_v39 = vmul.f32 %v2718_v34, %v2718_v34 }
 0xf6b   : > { %v2721_v38 = vmul.f32 %v2719_v37, %v2719_v37 }
 0xf6d   : > { %v2724_v41 = vrot.slane %v2721_v38, 7 }
 0xf6f   : > { %v2725_v43 = vsel %vm2706_vm9, %v2724_v41, %v2720_v39 }
 0xf70   : > { %v2727_v35 = vsel %vm2709_vm10, %v2725_v43, 0.0 }
 0xf71   : > { %2728 = vadd.xlane.f32.xlu1 %v2727_v35 }
 0xffe   : > { %v2729_v54 = vpop.xlane.xlu1 %2728 }
 0xfff   : > { %v2730_v55 = vmul.f32 0.03125, %v2729_v54 }
0x1001   : > { %v2731_v56 = vadd.f32 1e-05, %v2730_v55 }
0x1003   : > { %3335 = vrsqrt.f32 %v2731_v56 }
0x100d   : > { %v3336_v57 = vpop.eup %3335 }
0x100e   : > { %v2734_v59 = vrot.slane %v3336_v57, 1  ;;  %v2737_v9 = vmul.f32 %v3336_v57, %v2718_v34 }
0x1010   : > { %v2738_v61 = vmul.f32 %v2734_v59, %v2719_v37  ;;  %v2745_v62 = vmul.f32 %v3082_v60, %v2737_v9 }
0x1012   : > { %v2746_v63 = vmul.f32 %v3082_v60, %v2738_v61  ;;  %v2753_v5 = vadd.f32 %v3083_v2, %v2745_v62 }
0x1014   : > { %v2754_v3 = vadd.f32 %v3083_v2, %v2746_v63 }
0x1016   : > { %v2768_v42 = vrot.slane %v2754_v3, 7 }
0x1018   : > { %v2769_v6 = vsel %vm2706_vm9, %v2768_v42, %v2753_v5 }
0x1019   : > { %3240 = vmatmul.mubr.msk.f32.vlgmr.msra.gmra.mrb[0].mxu0 %vm740_vm2, %v2769_v6 }
0x10ec   : > { %v2838_v14 = vpop.f32.mrb[0].mxu0 }
0x10ed   : > { %v2839_v15 = vadd.f32 %v3084_v46, %v2838_v14  ;;  %v3241_v18 = vpop.f32.mrb[1].mxu0 }
0x10ef   : > { %v2849_v19 = vrot.slane %v2839_v15, %v2848_v13 }
0x10f1   : > { %v2850_v20 = vcombine.high %v2849_v19, %v2849_v19  ;;  %v2857_v21 = vrot.slane %v2849_v19, %v2848_v13 }
0x10f3   : > { %v2864_v53 = vrot.slane %v2850_v20, %v2848_v13  ;;  %2868 = vst.msk [vmem:[%s3944_s12] sm:$0x1] %vm2867_vm11, %v2857_v21 }
0x10f5   : > { %2869 = vst.msk [vmem:[%s3944_s12 + $0x1] sm:$0x1] %vm2867_vm11, %v2864_v53 }
0x10f6 PF: > { %s3945_s17 = sld [smem:[#allocation5_spill]]  ;;  %s3946_s20 = sld [smem:[#allocation4_spill]] }
0x10f7   : > { %s3947_s21 = sld [smem:[#allocation6_spill]] }
0x10fc   : > { %s27_s22 = sadd.s32 1, %s3945_s17  }
0x10fd   : > { %p24_p7 = scmp.ge.s32.totalorder %s27_s22, 4  }
0x10ff   :  { %26 = sbr.rel (!%p24_p7) target bundleno = 4 (0x4), region = 142 }

</bundles_post_ra>
